<compile_context>
chip_gen: v7x
topology: tpu7x:2x2x1
jax: 0.10.0
libtpu: 0.0.40
codegen_flags: <defaults>
</compile_context>

<pallas_src>
import numpy as np
import jax
import jax.numpy as jnp
from jax.experimental import pallas as pl
from jax.experimental.pallas import tpu as pltpu

# ----------------------------- configuration ------------------------------
EMBED_DIM = 32                 # embed_dim
IMG_EMB_SIZE = (8, 8)          # image_embedding_size (H, W)
INPUT_IMG_SIZE = (32, 32)      # input_image_size (H, W)
MASK_IN_CHANS = 16             # mask_in_chans
LN_EPS = 1e-6

_TWO_PI = float(2.0 * np.pi)
_HALF_PI = float(0.5 * np.pi)
_INV_W = 1.0 / float(INPUT_IMG_SIZE[1])
_INV_H = 1.0 / float(INPUT_IMG_SIZE[0])

_SLAB_ROWS = 72                # 8 (w1/b1/g1/be1) + 16 (w2..) + 32 (w3..) + 16 (gauss)
_LANES = 128


def _pad128(n):
    return max(_LANES, ((n + _LANES - 1) // _LANES) * _LANES)


# ------------------------ in-kernel compute helpers ------------------------
def _ln_channels(y, gamma, beta):
    """LayerNorm2d: normalize each column (spatial position) over channel rows."""
    u = jnp.mean(y, axis=0, keepdims=True)
    v = jnp.mean((y - u) ** 2, axis=0, keepdims=True)
    return (y - u) * jax.lax.rsqrt(v + LN_EPS) * gamma + beta


def _unpack_slab(slab_ref):
    """Static (free) Ref slices of the packed parameter slab."""
    w1 = slab_ref[0:4, 0:4]            # (4, 4)   conv1 weight, cols = ih*2+iw
    b1 = slab_ref[0:4, 4:5]
    g1 = slab_ref[0:4, 5:6]
    be1 = slab_ref[0:4, 6:7]
    w2 = slab_ref[8:24, 0:16]          # (16, 16) conv2 weight, cols = 4*s+cin
    b2 = slab_ref[8:24, 16:17]
    g2 = slab_ref[8:24, 17:18]
    be2 = slab_ref[8:24, 18:19]
    w3 = slab_ref[24:56, 0:16]         # (32, 16) conv3 1x1 weight
    b3 = slab_ref[24:56, 16:17]
    gss = slab_ref[56:72, 0:2]         # (16, 2)  gaussian matrix (transposed)
    return w1, b1, g1, be1, w2, b2, g2, be2, w3, b3, gss


def _dense_compute(xp, w1, b1, g1, be1, w2, b2, g2, be2, w3, b3):
    """Fused mask_downscaling in transposed (channels x positions) layout.

    xp: (16, M) 4x4 mask patches; row = 4*s + (ih*2+iw) with s = kh*2+kw the
    stage-2 kernel position; column = (b, h, w) of the 8x8 grid (lane dense).
    """
    y1_parts = []
    for s in range(4):                               # (kh, kw) sub-block
        xs = xp[4 * s:4 * s + 4, :]                  # (4, M) stage-1 2x2 patch
        # conv1 (K=4, Cout=4): VPU broadcast FMAs (too small for MXU to matter)
        y1 = w1[:, 0:1] * xs[0:1, :]
        for k in range(1, 4):
            y1 = y1 + w1[:, k:k + 1] * xs[k:k + 1, :]
        y1 = _ln_channels(y1 + b1, g1, be1)
        y1_parts.append(jax.nn.gelu(y1, approximate=True))   # tanh -> EUP
    y1_all = jnp.concatenate(y1_parts, axis=0)       # (16, M), rows = 4*s+cin
    # conv2 (16x16 @ 16xM) on the MXU
    y2 = jnp.dot(w2, y1_all, preferred_element_type=jnp.float32) + b2
    y2 = jax.nn.gelu(_ln_channels(y2, g2, be2), approximate=True)
    # conv3 1x1 (32x16 @ 16xM) on the MXU
    y3 = jnp.dot(w3, y2, preferred_element_type=jnp.float32) + b3
    return y3                                         # (32, M) lane dense


def _sparse_compute(tok, add, gauss_t):
    """Random-Fourier PE + precomputed label-embedding addend.

    tok: (3, M) rows = [x, y, valid]; add: (D, M) precomputed per-token
    embedding (not_a_point / point / box-corner); gauss_t: (D/2, 2).
    """
    cx = 2.0 * ((tok[0:1, :] + 0.5) * _INV_W) - 1.0
    cy = 2.0 * ((tok[1:2, :] + 0.5) * _INV_H) - 1.0
    valid = tok[2:3, :]
    proj = _TWO_PI * (gauss_t[:, 0:1] * cx + gauss_t[:, 1:2] * cy)   # (D/2, M)
    # single transcendental pass: sin([x, x + pi/2]) == [sin(x) | cos(x)]
    pe = jnp.sin(jnp.concatenate([proj, proj + _HALF_PI], axis=0))   # (D, M)
    return pe * valid + add


# ------------------------------- kernels -----------------------------------
def _fused_kernel(xp_ref, slab_ref, tok_ref, add_ref, dense_ref, sparse_ref):
    w1, b1, g1, be1, w2, b2, g2, be2, w3, b3, gss = _unpack_slab(slab_ref)
    dense_ref[...] = _dense_compute(xp_ref[...], w1, b1, g1, be1,
                                    w2, b2, g2, be2, w3, b3)
    sparse_ref[...] = _sparse_compute(tok_ref[...], add_ref[...], gss)


def _dense_kernel(xp_ref, slab_ref, dense_ref):
    w1, b1, g1, be1, w2, b2, g2, be2, w3, b3, _ = _unpack_slab(slab_ref)
    dense_ref[...] = _dense_compute(xp_ref[...], w1, b1, g1, be1,
                                    w2, b2, g2, be2, w3, b3)


def _sparse_kernel(slab_ref, tok_ref, add_ref, sparse_ref):
    *_, gss = _unpack_slab(slab_ref)
    sparse_ref[...] = _sparse_compute(tok_ref[...], add_ref[...], gss)


# ----------------------------- pallas wrapper -------------------------------
def _vmem_spec():
    return pl.BlockSpec(memory_space=pltpu.MemorySpace.VMEM)


def _run(kernel, inputs, out_shapes):
    multi = isinstance(out_shapes, (tuple, list))
    outs = tuple(out_shapes) if multi else (out_shapes,)
    out_specs = tuple(_vmem_spec() for _ in outs)
    return pl.pallas_call(
        kernel,
        out_shape=outs if multi else outs[0],
        in_specs=[_vmem_spec() for _ in inputs],
        out_specs=out_specs if multi else out_specs[0],
    )(*inputs)


# --------------------------------- glue ------------------------------------
def _mask_to_patches(masks):
    """(B,1,4H,4W) NCHW -> (16, pad128(B*H*W)); row=(kh,kw,ih,iw), col=(b,h,w)."""
    B = masks.shape[0]
    He, We = IMG_EMB_SIZE
    x = masks.astype(jnp.float32)[:, 0]                 # (B, 4H, 4W)
    x = x.reshape(B, He, 2, 2, We, 2, 2)                # (b, h, kh, ih, w, kw, iw)
    x = jnp.transpose(x, (2, 5, 3, 6, 0, 1, 4))         # (kh, kw, ih, iw, b, h, w)
    M = B * He * We
    xp = x.reshape(16, M)
    Mp = _pad128(M)
    if Mp != M:
        xp = jnp.pad(xp, ((0, 0), (0, Mp - M)))
    return xp, M, Mp


def _pack_weight_slab(params):
    """Pack every small parameter into one (72, 128) f32 slab (single DMA)."""
    C4, C, D = MASK_IN_CHANS // 4, MASK_IN_CHANS, EMBED_DIM
    w1 = params["conv1_w"].reshape(C4, 4)                                   # (c1, ih*2+iw)
    w2 = jnp.transpose(params["conv2_w"], (0, 2, 3, 1)).reshape(C, 4 * C4)  # (c2, 4*s+cin)
    w3 = params["conv3_w"][:, :, 0, 0]                                      # (D, C)
    col = lambda v: v.reshape(-1, 1)
    slab = jnp.zeros((_SLAB_ROWS, _LANES), jnp.float32)
    slab = slab.at[0:4, 0:4].set(w1)
    slab = slab.at[0:4, 4:5].set(col(params["conv1_b"]))
    slab = slab.at[0:4, 5:6].set(col(params["ln1_g"]))
    slab = slab.at[0:4, 6:7].set(col(params["ln1_b"]))
    slab = slab.at[8:24, 0:16].set(w2)
    slab = slab.at[8:24, 16:17].set(col(params["conv2_b"]))
    slab = slab.at[8:24, 17:18].set(col(params["ln2_g"]))
    slab = slab.at[8:24, 18:19].set(col(params["ln2_b"]))
    slab = slab.at[24:56, 0:16].set(w3)
    slab = slab.at[24:56, 16:17].set(col(params["conv3_b"]))
    slab = slab.at[56:72, 0:2].set(params["gauss"].T)
    return slab


def _build_tokens(points, boxes, bs, params):
    """Flatten points (+pad) and box corners into lane-padded token arrays.

    Returns tok (3, Mp) = [x; y; valid], add (D, Mp) precomputed embedding
    addend (host-side jnp.take of [not_a_point, pe0..pe3]), N tokens, M=bs*N.
    """
    coords_parts, label_parts = [], []
    if points is not None:
        c, l = points
        c = c.astype(jnp.float32)
        l = l.astype(jnp.int32)
        if boxes is None:   # pad with a "not a point" token
            c = jnp.concatenate([c, jnp.zeros((bs, 1, 2), jnp.float32)], axis=1)
            l = jnp.concatenate([l, -jnp.ones((bs, 1), jnp.int32)], axis=1)
        coords_parts.append(c)
        label_parts.append(l)
    if boxes is not None:
        corners = boxes.astype(jnp.float32).reshape(bs, 2, 2)
        coords_parts.append(corners)
        label_parts.append(jnp.tile(jnp.array([[2, 3]], jnp.int32), (bs, 1)))
    coords = jnp.concatenate(coords_parts, axis=1)      # (bs, N, 2)
    labels = jnp.concatenate(label_parts, axis=1)       # (bs, N)
    N = coords.shape[1]
    M = bs * N
    Mp = _pad128(M)

    coords_t = coords.reshape(M, 2).T                   # (2, M) rows = [x, y]
    valid = (labels.reshape(1, M) != -1).astype(jnp.float32)
    tok = jnp.concatenate([coords_t, valid], axis=0)    # (3, M)
    tok = jnp.pad(tok, ((0, 0), (0, Mp - M)))

    # precompute 5-way label embedding: rows [not_a_point, pe0, pe1, pe2, pe3]
    table = jnp.concatenate([params["not_a_point"], params["point_emb"]], axis=0)
    add = jnp.take(table, labels.reshape(M) + 1, axis=0).T          # (D, M)
    add = jnp.pad(add, ((0, 0), (0, Mp - M)))
    return tok, add, N, M


def init_params(key):
    D, C4, C = EMBED_DIM, MASK_IN_CHANS // 4, MASK_IN_CHANS
    ks = jax.random.split(key, 10)
    p = {}
    p["gauss"] = jax.random.normal(ks[0], (2, D // 2), jnp.float32)      # scale=1
    p["point_emb"] = jax.random.normal(ks[1], (4, D), jnp.float32)       # 4 x nn.Embedding(1,D)
    p["not_a_point"] = jax.random.normal(ks[2], (1, D), jnp.float32)
    p["no_mask"] = jax.random.normal(ks[3], (1, D), jnp.float32)
    p["conv1_w"] = 0.1 * jax.random.normal(ks[4], (C4, 1, 2, 2), jnp.float32)
    p["conv1_b"] = 0.1 * jax.random.normal(ks[5], (C4,), jnp.float32)
    p["ln1_g"], p["ln1_b"] = jnp.ones((C4,), jnp.float32), jnp.zeros((C4,), jnp.float32)
    p["conv2_w"] = 0.1 * jax.random.normal(ks[6], (C, C4, 2, 2), jnp.float32)
    p["conv2_b"] = 0.1 * jax.random.normal(ks[7], (C,), jnp.float32)
    p["ln2_g"], p["ln2_b"] = jnp.ones((C,), jnp.float32), jnp.zeros((C,), jnp.float32)
    p["conv3_w"] = 0.1 * jax.random.normal(ks[8], (D, C, 1, 1), jnp.float32)
    p["conv3_b"] = 0.1 * jax.random.normal(ks[9], (D,), jnp.float32)
    return p


def prompt_encoder_forward(params, points=None, boxes=None, masks=None):
    D = EMBED_DIM
    He, We = IMG_EMB_SIZE

    if points is not None:
        bs = points[0].shape[0]
    elif boxes is not None:
        bs = boxes.shape[0]
    elif masks is not None:
        bs = masks.shape[0]
    else:
        bs = 1

    have_sparse = (points is not None) or (boxes is not None)
    have_dense = masks is not None

    slab = _pack_weight_slab(params) if (have_sparse or have_dense) else None

    if have_sparse:
        tok, add, N, Ms = _build_tokens(points, boxes, bs, params)
        Msp = tok.shape[1]

    sparse_t = None
    if have_dense:
        xp, Md, Mdp = _mask_to_patches(masks)
        if have_sparse:
            dense_t, sparse_t = _run(
                _fused_kernel, (xp, slab, tok, add),
                (jax.ShapeDtypeStruct((D, Mdp), jnp.float32),
                 jax.ShapeDtypeStruct((D, Msp), jnp.float32)))
        else:
            dense_t = _run(_dense_kernel, (xp, slab),
                           jax.ShapeDtypeStruct((D, Mdp), jnp.float32))
        dense = jnp.transpose(dense_t[:, :Md].reshape(D, bs, He, We),
                              (1, 0, 2, 3))                              # NCHW
    else:
        # trivial broadcast of no_mask_embed; kept in plain JAX (no hot compute)
        dense = jnp.broadcast_to(params["no_mask"].reshape(1, D, 1, 1),
                                 (bs, D, He, We))
        if have_sparse:
            sparse_t = _run(_sparse_kernel, (slab, tok, add),
                            jax.ShapeDtypeStruct((D, Msp), jnp.float32))

    if have_sparse:
        sparse = sparse_t[:, :Ms].T.reshape(bs, N, D)
    else:
        sparse = jnp.zeros((bs, 0, D), jnp.float32)
    return sparse, dense


# ------------------------- pure-JAX reference ------------------------------
def _ref_pe_encoding(params, coords_01):
    c = 2.0 * coords_01 - 1.0
    c = c @ params["gauss"]
    c = 2.0 * np.pi * c
    return jnp.concatenate([jnp.sin(c), jnp.cos(c)], axis=-1)


def _ref_ln2d(x, g, b):
    u = x.mean(1, keepdims=True)
    s = ((x - u) ** 2).mean(1, keepdims=True)
    x = (x - u) / jnp.sqrt(s + LN_EPS)
    return g[None, :, None, None] * x + b[None, :, None, None]


def reference_forward(params, points, boxes, masks):
    H_i, W_i = INPUT_IMG_SIZE
    inv = jnp.array([1.0 / W_i, 1.0 / H_i], jnp.float32)
    bs = points[0].shape[0]
    parts = []
    coords, labels = points
    pts = coords.astype(jnp.float32) + 0.5
    if boxes is None:
        pts = jnp.concatenate([pts, jnp.zeros((bs, 1, 2), jnp.float32)], 1)
        labels = jnp.concatenate([labels, -jnp.ones((bs, 1), labels.dtype)], 1)
    pe = _ref_pe_encoding(params, pts * inv)
    pe = jnp.where((labels == -1)[..., None], 0.0, pe)
    pe = pe + jnp.where((labels == -1)[..., None], params["not_a_point"][0], 0.0)
    pe = pe + jnp.where((labels == 0)[..., None], params["point_emb"][0], 0.0)
    pe = pe + jnp.where((labels == 1)[..., None], params["point_emb"][1], 0.0)
    parts.append(pe)
    if boxes is not None:
        corners = (boxes.astype(jnp.float32) + 0.5).reshape(-1, 2, 2)
        ce = _ref_pe_encoding(params, corners * inv)
        ce = ce.at[:, 0, :].add(params["point_emb"][2])
        ce = ce.at[:, 1, :].add(params["point_emb"][3])
        parts.append(ce)
    sparse = jnp.concatenate(parts, axis=1)

    dn = ("NCHW", "OIHW", "NCHW")
    x = masks.astype(jnp.float32)
    x = jax.lax.conv_general_dilated(x, params["conv1_w"], (2, 2), "VALID",
                                     dimension_numbers=dn)
    x = x + params["conv1_b"][None, :, None, None]
    x = jax.nn.gelu(_ref_ln2d(x, params["ln1_g"], params["ln1_b"]), approximate=False)
    x = jax.lax.conv_general_dilated(x, params["conv2_w"], (2, 2), "VALID",
                                     dimension_numbers=dn)
    x = x + params["conv2_b"][None, :, None, None]
    x = jax.nn.gelu(_ref_ln2d(x, params["ln2_g"], params["ln2_b"]), approximate=False)
    x = jax.lax.conv_general_dilated(x, params["conv3_w"], (1, 1), "VALID",
                                     dimension_numbers=dn)
    dense = x + params["conv3_b"][None, :, None, None]
    return sparse, dense


# --------------------------------- main -------------------------------------
if __name__ == "__main__":
    key = jax.random.PRNGKey(0)
    kp, kc, kl, kb, km = jax.random.split(key, 5)
    params = init_params(kp)

    bs, npts = 2, 3
    H_i, W_i = INPUT_IMG_SIZE
    coords = jax.random.uniform(kc, (bs, npts, 2), jnp.float32, 0.0, float(W_i))
    labels = jax.random.randint(kl, (bs, npts), 0, 2).astype(jnp.int32)
    boxes = jax.random.uniform(kb, (bs, 4), jnp.float32, 0.0, float(W_i))
    masks = jax.random.normal(
        km, (bs, 1, 4 * IMG_EMB_SIZE[0], 4 * IMG_EMB_SIZE[1]), jnp.float32)

    sparse, dense = prompt_encoder_forward(
        params, points=(coords, labels), boxes=boxes, masks=masks)
    jax.block_until_ready((sparse, dense))

    assert sparse.shape == (bs, npts + 2, EMBED_DIM)
    assert dense.shape == (bs, EMBED_DIM, IMG_EMB_SIZE[0], IMG_EMB_SIZE[1])

    ref_sparse, ref_dense = reference_forward(params, (coords, labels), boxes, masks)
    np.testing.assert_allclose(np.asarray(sparse), np.asarray(ref_sparse),
                               rtol=1e-2, atol=1e-2)
    np.testing.assert_allclose(np.asarray(dense), np.asarray(ref_dense),
                               rtol=1e-2, atol=1e-2)
    print("KERNEL_OK")
</pallas_src>

<mosaic_0001>
module attributes {stable_mosaic.version = 11 : i64} {
  func.func @_fused_kernel(%arg0: memref<16x128xf32, #tpu.memory_space<vmem>>, %arg1: memref<72x128xf32, #tpu.memory_space<vmem>>, %arg2: memref<3x128xf32, #tpu.memory_space<vmem>>, %arg3: memref<32x128xf32, #tpu.memory_space<vmem>>, %arg4: memref<32x128xf32, #tpu.memory_space<vmem>>, %arg5: memref<32x128xf32, #tpu.memory_space<vmem>>) attributes {dimension_semantics = [], scalar_prefetch = 0 : i64, scratch_operands = 0 : i64, tpu.core_type = #tpu.core_type<tc>} {
    %c0 = arith.constant 0 : index
    %c0_0 = arith.constant 0 : index
    %0 = vector.load %arg1[%c0, %c0_0] : memref<72x128xf32, #tpu.memory_space<vmem>>, vector<4x4xf32>
    %c0_1 = arith.constant 0 : index
    %c4 = arith.constant 4 : index
    %1 = vector.load %arg1[%c0_1, %c4] : memref<72x128xf32, #tpu.memory_space<vmem>>, vector<4x1xf32>
    %c0_2 = arith.constant 0 : index
    %c5 = arith.constant 5 : index
    %2 = vector.load %arg1[%c0_2, %c5] : memref<72x128xf32, #tpu.memory_space<vmem>>, vector<4x1xf32>
    %c0_3 = arith.constant 0 : index
    %c6 = arith.constant 6 : index
    %3 = vector.load %arg1[%c0_3, %c6] : memref<72x128xf32, #tpu.memory_space<vmem>>, vector<4x1xf32>
    %c8 = arith.constant 8 : index
    %c0_4 = arith.constant 0 : index
    %4 = vector.load %arg1[%c8, %c0_4] : memref<72x128xf32, #tpu.memory_space<vmem>>, vector<16x16xf32>
    %c8_5 = arith.constant 8 : index
    %c16 = arith.constant 16 : index
    %5 = vector.load %arg1[%c8_5, %c16] : memref<72x128xf32, #tpu.memory_space<vmem>>, vector<16x1xf32>
    %c8_6 = arith.constant 8 : index
    %c17 = arith.constant 17 : index
    %6 = vector.load %arg1[%c8_6, %c17] : memref<72x128xf32, #tpu.memory_space<vmem>>, vector<16x1xf32>
    %c8_7 = arith.constant 8 : index
    %c18 = arith.constant 18 : index
    %7 = vector.load %arg1[%c8_7, %c18] : memref<72x128xf32, #tpu.memory_space<vmem>>, vector<16x1xf32>
    %c24 = arith.constant 24 : index
    %c0_8 = arith.constant 0 : index
    %8 = vector.load %arg1[%c24, %c0_8] : memref<72x128xf32, #tpu.memory_space<vmem>>, vector<32x16xf32>
    %c24_9 = arith.constant 24 : index
    %c16_10 = arith.constant 16 : index
    %9 = vector.load %arg1[%c24_9, %c16_10] : memref<72x128xf32, #tpu.memory_space<vmem>>, vector<32x1xf32>
    %c56 = arith.constant 56 : index
    %c0_11 = arith.constant 0 : index
    %10 = vector.load %arg1[%c56, %c0_11] : memref<72x128xf32, #tpu.memory_space<vmem>>, vector<16x2xf32>
    %c0_12 = arith.constant 0 : index
    %c0_13 = arith.constant 0 : index
    %11 = vector.load %arg0[%c0_12, %c0_13] : memref<16x128xf32, #tpu.memory_space<vmem>>, vector<16x128xf32>
    %12 = vector.extract_strided_slice %11 {offsets = [0, 0], sizes = [4, 128], strides = [1, 1]} : vector<16x128xf32> to vector<4x128xf32>
    %13 = vector.extract_strided_slice %0 {offsets = [0, 0], sizes = [4, 1], strides = [1, 1]} : vector<4x4xf32> to vector<4x1xf32>
    %14 = vector.extract_strided_slice %12 {offsets = [0, 0], sizes = [1, 128], strides = [1, 1]} : vector<4x128xf32> to vector<1x128xf32>
    %15 = vector.broadcast %13 : vector<4x1xf32> to vector<4x128xf32>
    %16 = vector.broadcast %14 : vector<1x128xf32> to vector<4x128xf32>
    %17 = arith.mulf %15, %16 : vector<4x128xf32>
    %18 = vector.extract_strided_slice %0 {offsets = [0, 1], sizes = [4, 1], strides = [1, 1]} : vector<4x4xf32> to vector<4x1xf32>
    %19 = vector.extract_strided_slice %12 {offsets = [1, 0], sizes = [1, 128], strides = [1, 1]} : vector<4x128xf32> to vector<1x128xf32>
    %20 = vector.broadcast %18 : vector<4x1xf32> to vector<4x128xf32>
    %21 = vector.broadcast %19 : vector<1x128xf32> to vector<4x128xf32>
    %22 = arith.mulf %20, %21 : vector<4x128xf32>
    %23 = arith.addf %17, %22 : vector<4x128xf32>
    %24 = vector.extract_strided_slice %0 {offsets = [0, 2], sizes = [4, 1], strides = [1, 1]} : vector<4x4xf32> to vector<4x1xf32>
    %25 = vector.extract_strided_slice %12 {offsets = [2, 0], sizes = [1, 128], strides = [1, 1]} : vector<4x128xf32> to vector<1x128xf32>
    %26 = vector.broadcast %24 : vector<4x1xf32> to vector<4x128xf32>
    %27 = vector.broadcast %25 : vector<1x128xf32> to vector<4x128xf32>
    %28 = arith.mulf %26, %27 : vector<4x128xf32>
    %29 = arith.addf %23, %28 : vector<4x128xf32>
    %30 = vector.extract_strided_slice %0 {offsets = [0, 3], sizes = [4, 1], strides = [1, 1]} : vector<4x4xf32> to vector<4x1xf32>
    %31 = vector.extract_strided_slice %12 {offsets = [3, 0], sizes = [1, 128], strides = [1, 1]} : vector<4x128xf32> to vector<1x128xf32>
    %32 = vector.broadcast %30 : vector<4x1xf32> to vector<4x128xf32>
    %33 = vector.broadcast %31 : vector<1x128xf32> to vector<4x128xf32>
    %34 = arith.mulf %32, %33 : vector<4x128xf32>
    %35 = arith.addf %29, %34 : vector<4x128xf32>
    %36 = vector.broadcast %1 : vector<4x1xf32> to vector<4x128xf32>
    %37 = arith.addf %35, %36 : vector<4x128xf32>
    %cst = arith.constant dense<0.000000e+00> : vector<128xf32>
    %38 = vector.multi_reduction <add>, %37, %cst [0] : vector<4x128xf32> to vector<128xf32>
    %39 = vector.shape_cast %38 : vector<128xf32> to vector<1x128xf32>
    %cst_14 = arith.constant 4.000000e+00 : f32
    %40 = vector.broadcast %cst_14 : f32 to vector<1x128xf32>
    %41 = arith.divf %39, %40 : vector<1x128xf32>
    %42 = vector.broadcast %41 : vector<1x128xf32> to vector<4x128xf32>
    %43 = arith.subf %37, %42 : vector<4x128xf32>
    %44 = arith.mulf %43, %43 : vector<4x128xf32>
    %cst_15 = arith.constant dense<0.000000e+00> : vector<128xf32>
    %45 = vector.multi_reduction <add>, %44, %cst_15 [0] : vector<4x128xf32> to vector<128xf32>
    %46 = vector.shape_cast %45 : vector<128xf32> to vector<1x128xf32>
    %cst_16 = arith.constant 4.000000e+00 : f32
    %47 = vector.broadcast %cst_16 : f32 to vector<1x128xf32>
    %48 = arith.divf %46, %47 : vector<1x128xf32>
    %49 = vector.broadcast %41 : vector<1x128xf32> to vector<4x128xf32>
    %50 = arith.subf %37, %49 : vector<4x128xf32>
    %cst_17 = arith.constant 9.99999997E-7 : f32
    %51 = vector.broadcast %cst_17 : f32 to vector<1x128xf32>
    %52 = arith.addf %48, %51 : vector<1x128xf32>
    %53 = math.rsqrt %52 : vector<1x128xf32>
    %54 = vector.broadcast %53 : vector<1x128xf32> to vector<4x128xf32>
    %55 = arith.mulf %50, %54 : vector<4x128xf32>
    %56 = vector.broadcast %2 : vector<4x1xf32> to vector<4x128xf32>
    %57 = arith.mulf %55, %56 : vector<4x128xf32>
    %58 = vector.broadcast %3 : vector<4x1xf32> to vector<4x128xf32>
    %59 = arith.addf %57, %58 : vector<4x128xf32>
    %60 = arith.mulf %59, %59 : vector<4x128xf32>
    %61 = arith.mulf %59, %60 : vector<4x128xf32>
    %cst_18 = arith.constant 4.471500e-02 : f32
    %62 = vector.broadcast %cst_18 : f32 to vector<4x128xf32>
    %63 = arith.mulf %62, %61 : vector<4x128xf32>
    %64 = arith.addf %59, %63 : vector<4x128xf32>
    %cst_19 = arith.constant 0.797884583 : f32
    %65 = vector.broadcast %cst_19 : f32 to vector<4x128xf32>
    %66 = arith.mulf %65, %64 : vector<4x128xf32>
    %67 = math.tanh %66 : vector<4x128xf32>
    %cst_20 = arith.constant 1.000000e+00 : f32
    %68 = vector.broadcast %cst_20 : f32 to vector<4x128xf32>
    %69 = arith.addf %68, %67 : vector<4x128xf32>
    %cst_21 = arith.constant 5.000000e-01 : f32
    %70 = vector.broadcast %cst_21 : f32 to vector<4x128xf32>
    %71 = arith.mulf %70, %69 : vector<4x128xf32>
    %72 = arith.mulf %59, %71 : vector<4x128xf32>
    %73 = vector.extract_strided_slice %11 {offsets = [4, 0], sizes = [4, 128], strides = [1, 1]} : vector<16x128xf32> to vector<4x128xf32>
    %74 = vector.extract_strided_slice %0 {offsets = [0, 0], sizes = [4, 1], strides = [1, 1]} : vector<4x4xf32> to vector<4x1xf32>
    %75 = vector.extract_strided_slice %73 {offsets = [0, 0], sizes = [1, 128], strides = [1, 1]} : vector<4x128xf32> to vector<1x128xf32>
    %76 = vector.broadcast %74 : vector<4x1xf32> to vector<4x128xf32>
    %77 = vector.broadcast %75 : vector<1x128xf32> to vector<4x128xf32>
    %78 = arith.mulf %76, %77 : vector<4x128xf32>
    %79 = vector.extract_strided_slice %0 {offsets = [0, 1], sizes = [4, 1], strides = [1, 1]} : vector<4x4xf32> to vector<4x1xf32>
    %80 = vector.extract_strided_slice %73 {offsets = [1, 0], sizes = [1, 128], strides = [1, 1]} : vector<4x128xf32> to vector<1x128xf32>
    %81 = vector.broadcast %79 : vector<4x1xf32> to vector<4x128xf32>
    %82 = vector.broadcast %80 : vector<1x128xf32> to vector<4x128xf32>
    %83 = arith.mulf %81, %82 : vector<4x128xf32>
    %84 = arith.addf %78, %83 : vector<4x128xf32>
    %85 = vector.extract_strided_slice %0 {offsets = [0, 2], sizes = [4, 1], strides = [1, 1]} : vector<4x4xf32> to vector<4x1xf32>
    %86 = vector.extract_strided_slice %73 {offsets = [2, 0], sizes = [1, 128], strides = [1, 1]} : vector<4x128xf32> to vector<1x128xf32>
    %87 = vector.broadcast %85 : vector<4x1xf32> to vector<4x128xf32>
    %88 = vector.broadcast %86 : vector<1x128xf32> to vector<4x128xf32>
    %89 = arith.mulf %87, %88 : vector<4x128xf32>
    %90 = arith.addf %84, %89 : vector<4x128xf32>
    %91 = vector.extract_strided_slice %0 {offsets = [0, 3], sizes = [4, 1], strides = [1, 1]} : vector<4x4xf32> to vector<4x1xf32>
    %92 = vector.extract_strided_slice %73 {offsets = [3, 0], sizes = [1, 128], strides = [1, 1]} : vector<4x128xf32> to vector<1x128xf32>
    %93 = vector.broadcast %91 : vector<4x1xf32> to vector<4x128xf32>
    %94 = vector.broadcast %92 : vector<1x128xf32> to vector<4x128xf32>
    %95 = arith.mulf %93, %94 : vector<4x128xf32>
    %96 = arith.addf %90, %95 : vector<4x128xf32>
    %97 = vector.broadcast %1 : vector<4x1xf32> to vector<4x128xf32>
    %98 = arith.addf %96, %97 : vector<4x128xf32>
    %cst_22 = arith.constant dense<0.000000e+00> : vector<128xf32>
    %99 = vector.multi_reduction <add>, %98, %cst_22 [0] : vector<4x128xf32> to vector<128xf32>
    %100 = vector.shape_cast %99 : vector<128xf32> to vector<1x128xf32>
    %cst_23 = arith.constant 4.000000e+00 : f32
    %101 = vector.broadcast %cst_23 : f32 to vector<1x128xf32>
    %102 = arith.divf %100, %101 : vector<1x128xf32>
    %103 = vector.broadcast %102 : vector<1x128xf32> to vector<4x128xf32>
    %104 = arith.subf %98, %103 : vector<4x128xf32>
    %105 = arith.mulf %104, %104 : vector<4x128xf32>
    %cst_24 = arith.constant dense<0.000000e+00> : vector<128xf32>
    %106 = vector.multi_reduction <add>, %105, %cst_24 [0] : vector<4x128xf32> to vector<128xf32>
    %107 = vector.shape_cast %106 : vector<128xf32> to vector<1x128xf32>
    %cst_25 = arith.constant 4.000000e+00 : f32
    %108 = vector.broadcast %cst_25 : f32 to vector<1x128xf32>
    %109 = arith.divf %107, %108 : vector<1x128xf32>
    %110 = vector.broadcast %102 : vector<1x128xf32> to vector<4x128xf32>
    %111 = arith.subf %98, %110 : vector<4x128xf32>
    %cst_26 = arith.constant 9.99999997E-7 : f32
    %112 = vector.broadcast %cst_26 : f32 to vector<1x128xf32>
    %113 = arith.addf %109, %112 : vector<1x128xf32>
    %114 = math.rsqrt %113 : vector<1x128xf32>
    %115 = vector.broadcast %114 : vector<1x128xf32> to vector<4x128xf32>
    %116 = arith.mulf %111, %115 : vector<4x128xf32>
    %117 = vector.broadcast %2 : vector<4x1xf32> to vector<4x128xf32>
    %118 = arith.mulf %116, %117 : vector<4x128xf32>
    %119 = vector.broadcast %3 : vector<4x1xf32> to vector<4x128xf32>
    %120 = arith.addf %118, %119 : vector<4x128xf32>
    %121 = arith.mulf %120, %120 : vector<4x128xf32>
    %122 = arith.mulf %120, %121 : vector<4x128xf32>
    %cst_27 = arith.constant 4.471500e-02 : f32
    %123 = vector.broadcast %cst_27 : f32 to vector<4x128xf32>
    %124 = arith.mulf %123, %122 : vector<4x128xf32>
    %125 = arith.addf %120, %124 : vector<4x128xf32>
    %cst_28 = arith.constant 0.797884583 : f32
    %126 = vector.broadcast %cst_28 : f32 to vector<4x128xf32>
    %127 = arith.mulf %126, %125 : vector<4x128xf32>
    %128 = math.tanh %127 : vector<4x128xf32>
    %cst_29 = arith.constant 1.000000e+00 : f32
    %129 = vector.broadcast %cst_29 : f32 to vector<4x128xf32>
    %130 = arith.addf %129, %128 : vector<4x128xf32>
    %cst_30 = arith.constant 5.000000e-01 : f32
    %131 = vector.broadcast %cst_30 : f32 to vector<4x128xf32>
    %132 = arith.mulf %131, %130 : vector<4x128xf32>
    %133 = arith.mulf %120, %132 : vector<4x128xf32>
    %134 = vector.extract_strided_slice %11 {offsets = [8, 0], sizes = [4, 128], strides = [1, 1]} : vector<16x128xf32> to vector<4x128xf32>
    %135 = vector.extract_strided_slice %0 {offsets = [0, 0], sizes = [4, 1], strides = [1, 1]} : vector<4x4xf32> to vector<4x1xf32>
    %136 = vector.extract_strided_slice %134 {offsets = [0, 0], sizes = [1, 128], strides = [1, 1]} : vector<4x128xf32> to vector<1x128xf32>
    %137 = vector.broadcast %135 : vector<4x1xf32> to vector<4x128xf32>
    %138 = vector.broadcast %136 : vector<1x128xf32> to vector<4x128xf32>
    %139 = arith.mulf %137, %138 : vector<4x128xf32>
    %140 = vector.extract_strided_slice %0 {offsets = [0, 1], sizes = [4, 1], strides = [1, 1]} : vector<4x4xf32> to vector<4x1xf32>
    %141 = vector.extract_strided_slice %134 {offsets = [1, 0], sizes = [1, 128], strides = [1, 1]} : vector<4x128xf32> to vector<1x128xf32>
    %142 = vector.broadcast %140 : vector<4x1xf32> to vector<4x128xf32>
    %143 = vector.broadcast %141 : vector<1x128xf32> to vector<4x128xf32>
    %144 = arith.mulf %142, %143 : vector<4x128xf32>
    %145 = arith.addf %139, %144 : vector<4x128xf32>
    %146 = vector.extract_strided_slice %0 {offsets = [0, 2], sizes = [4, 1], strides = [1, 1]} : vector<4x4xf32> to vector<4x1xf32>
    %147 = vector.extract_strided_slice %134 {offsets = [2, 0], sizes = [1, 128], strides = [1, 1]} : vector<4x128xf32> to vector<1x128xf32>
    %148 = vector.broadcast %146 : vector<4x1xf32> to vector<4x128xf32>
    %149 = vector.broadcast %147 : vector<1x128xf32> to vector<4x128xf32>
    %150 = arith.mulf %148, %149 : vector<4x128xf32>
    %151 = arith.addf %145, %150 : vector<4x128xf32>
    %152 = vector.extract_strided_slice %0 {offsets = [0, 3], sizes = [4, 1], strides = [1, 1]} : vector<4x4xf32> to vector<4x1xf32>
    %153 = vector.extract_strided_slice %134 {offsets = [3, 0], sizes = [1, 128], strides = [1, 1]} : vector<4x128xf32> to vector<1x128xf32>
    %154 = vector.broadcast %152 : vector<4x1xf32> to vector<4x128xf32>
    %155 = vector.broadcast %153 : vector<1x128xf32> to vector<4x128xf32>
    %156 = arith.mulf %154, %155 : vector<4x128xf32>
    %157 = arith.addf %151, %156 : vector<4x128xf32>
    %158 = vector.broadcast %1 : vector<4x1xf32> to vector<4x128xf32>
    %159 = arith.addf %157, %158 : vector<4x128xf32>
    %cst_31 = arith.constant dense<0.000000e+00> : vector<128xf32>
    %160 = vector.multi_reduction <add>, %159, %cst_31 [0] : vector<4x128xf32> to vector<128xf32>
    %161 = vector.shape_cast %160 : vector<128xf32> to vector<1x128xf32>
    %cst_32 = arith.constant 4.000000e+00 : f32
    %162 = vector.broadcast %cst_32 : f32 to vector<1x128xf32>
    %163 = arith.divf %161, %162 : vector<1x128xf32>
    %164 = vector.broadcast %163 : vector<1x128xf32> to vector<4x128xf32>
    %165 = arith.subf %159, %164 : vector<4x128xf32>
    %166 = arith.mulf %165, %165 : vector<4x128xf32>
    %cst_33 = arith.constant dense<0.000000e+00> : vector<128xf32>
    %167 = vector.multi_reduction <add>, %166, %cst_33 [0] : vector<4x128xf32> to vector<128xf32>
    %168 = vector.shape_cast %167 : vector<128xf32> to vector<1x128xf32>
    %cst_34 = arith.constant 4.000000e+00 : f32
    %169 = vector.broadcast %cst_34 : f32 to vector<1x128xf32>
    %170 = arith.divf %168, %169 : vector<1x128xf32>
    %171 = vector.broadcast %163 : vector<1x128xf32> to vector<4x128xf32>
    %172 = arith.subf %159, %171 : vector<4x128xf32>
    %cst_35 = arith.constant 9.99999997E-7 : f32
    %173 = vector.broadcast %cst_35 : f32 to vector<1x128xf32>
    %174 = arith.addf %170, %173 : vector<1x128xf32>
    %175 = math.rsqrt %174 : vector<1x128xf32>
    %176 = vector.broadcast %175 : vector<1x128xf32> to vector<4x128xf32>
    %177 = arith.mulf %172, %176 : vector<4x128xf32>
    %178 = vector.broadcast %2 : vector<4x1xf32> to vector<4x128xf32>
    %179 = arith.mulf %177, %178 : vector<4x128xf32>
    %180 = vector.broadcast %3 : vector<4x1xf32> to vector<4x128xf32>
    %181 = arith.addf %179, %180 : vector<4x128xf32>
    %182 = arith.mulf %181, %181 : vector<4x128xf32>
    %183 = arith.mulf %181, %182 : vector<4x128xf32>
    %cst_36 = arith.constant 4.471500e-02 : f32
    %184 = vector.broadcast %cst_36 : f32 to vector<4x128xf32>
    %185 = arith.mulf %184, %183 : vector<4x128xf32>
    %186 = arith.addf %181, %185 : vector<4x128xf32>
    %cst_37 = arith.constant 0.797884583 : f32
    %187 = vector.broadcast %cst_37 : f32 to vector<4x128xf32>
    %188 = arith.mulf %187, %186 : vector<4x128xf32>
    %189 = math.tanh %188 : vector<4x128xf32>
    %cst_38 = arith.constant 1.000000e+00 : f32
    %190 = vector.broadcast %cst_38 : f32 to vector<4x128xf32>
    %191 = arith.addf %190, %189 : vector<4x128xf32>
    %cst_39 = arith.constant 5.000000e-01 : f32
    %192 = vector.broadcast %cst_39 : f32 to vector<4x128xf32>
    %193 = arith.mulf %192, %191 : vector<4x128xf32>
    %194 = arith.mulf %181, %193 : vector<4x128xf32>
    %195 = vector.extract_strided_slice %11 {offsets = [12, 0], sizes = [4, 128], strides = [1, 1]} : vector<16x128xf32> to vector<4x128xf32>
    %196 = vector.extract_strided_slice %0 {offsets = [0, 0], sizes = [4, 1], strides = [1, 1]} : vector<4x4xf32> to vector<4x1xf32>
    %197 = vector.extract_strided_slice %195 {offsets = [0, 0], sizes = [1, 128], strides = [1, 1]} : vector<4x128xf32> to vector<1x128xf32>
    %198 = vector.broadcast %196 : vector<4x1xf32> to vector<4x128xf32>
    %199 = vector.broadcast %197 : vector<1x128xf32> to vector<4x128xf32>
    %200 = arith.mulf %198, %199 : vector<4x128xf32>
    %201 = vector.extract_strided_slice %0 {offsets = [0, 1], sizes = [4, 1], strides = [1, 1]} : vector<4x4xf32> to vector<4x1xf32>
    %202 = vector.extract_strided_slice %195 {offsets = [1, 0], sizes = [1, 128], strides = [1, 1]} : vector<4x128xf32> to vector<1x128xf32>
    %203 = vector.broadcast %201 : vector<4x1xf32> to vector<4x128xf32>
    %204 = vector.broadcast %202 : vector<1x128xf32> to vector<4x128xf32>
    %205 = arith.mulf %203, %204 : vector<4x128xf32>
    %206 = arith.addf %200, %205 : vector<4x128xf32>
    %207 = vector.extract_strided_slice %0 {offsets = [0, 2], sizes = [4, 1], strides = [1, 1]} : vector<4x4xf32> to vector<4x1xf32>
    %208 = vector.extract_strided_slice %195 {offsets = [2, 0], sizes = [1, 128], strides = [1, 1]} : vector<4x128xf32> to vector<1x128xf32>
    %209 = vector.broadcast %207 : vector<4x1xf32> to vector<4x128xf32>
    %210 = vector.broadcast %208 : vector<1x128xf32> to vector<4x128xf32>
    %211 = arith.mulf %209, %210 : vector<4x128xf32>
    %212 = arith.addf %206, %211 : vector<4x128xf32>
    %213 = vector.extract_strided_slice %0 {offsets = [0, 3], sizes = [4, 1], strides = [1, 1]} : vector<4x4xf32> to vector<4x1xf32>
    %214 = vector.extract_strided_slice %195 {offsets = [3, 0], sizes = [1, 128], strides = [1, 1]} : vector<4x128xf32> to vector<1x128xf32>
    %215 = vector.broadcast %213 : vector<4x1xf32> to vector<4x128xf32>
    %216 = vector.broadcast %214 : vector<1x128xf32> to vector<4x128xf32>
    %217 = arith.mulf %215, %216 : vector<4x128xf32>
    %218 = arith.addf %212, %217 : vector<4x128xf32>
    %219 = vector.broadcast %1 : vector<4x1xf32> to vector<4x128xf32>
    %220 = arith.addf %218, %219 : vector<4x128xf32>
    %cst_40 = arith.constant dense<0.000000e+00> : vector<128xf32>
    %221 = vector.multi_reduction <add>, %220, %cst_40 [0] : vector<4x128xf32> to vector<128xf32>
    %222 = vector.shape_cast %221 : vector<128xf32> to vector<1x128xf32>
    %cst_41 = arith.constant 4.000000e+00 : f32
    %223 = vector.broadcast %cst_41 : f32 to vector<1x128xf32>
    %224 = arith.divf %222, %223 : vector<1x128xf32>
    %225 = vector.broadcast %224 : vector<1x128xf32> to vector<4x128xf32>
    %226 = arith.subf %220, %225 : vector<4x128xf32>
    %227 = arith.mulf %226, %226 : vector<4x128xf32>
    %cst_42 = arith.constant dense<0.000000e+00> : vector<128xf32>
    %228 = vector.multi_reduction <add>, %227, %cst_42 [0] : vector<4x128xf32> to vector<128xf32>
    %229 = vector.shape_cast %228 : vector<128xf32> to vector<1x128xf32>
    %cst_43 = arith.constant 4.000000e+00 : f32
    %230 = vector.broadcast %cst_43 : f32 to vector<1x128xf32>
    %231 = arith.divf %229, %230 : vector<1x128xf32>
    %232 = vector.broadcast %224 : vector<1x128xf32> to vector<4x128xf32>
    %233 = arith.subf %220, %232 : vector<4x128xf32>
    %cst_44 = arith.constant 9.99999997E-7 : f32
    %234 = vector.broadcast %cst_44 : f32 to vector<1x128xf32>
    %235 = arith.addf %231, %234 : vector<1x128xf32>
    %236 = math.rsqrt %235 : vector<1x128xf32>
    %237 = vector.broadcast %236 : vector<1x128xf32> to vector<4x128xf32>
    %238 = arith.mulf %233, %237 : vector<4x128xf32>
    %239 = vector.broadcast %2 : vector<4x1xf32> to vector<4x128xf32>
    %240 = arith.mulf %238, %239 : vector<4x128xf32>
    %241 = vector.broadcast %3 : vector<4x1xf32> to vector<4x128xf32>
    %242 = arith.addf %240, %241 : vector<4x128xf32>
    %243 = arith.mulf %242, %242 : vector<4x128xf32>
    %244 = arith.mulf %242, %243 : vector<4x128xf32>
    %cst_45 = arith.constant 4.471500e-02 : f32
    %245 = vector.broadcast %cst_45 : f32 to vector<4x128xf32>
    %246 = arith.mulf %245, %244 : vector<4x128xf32>
    %247 = arith.addf %242, %246 : vector<4x128xf32>
    %cst_46 = arith.constant 0.797884583 : f32
    %248 = vector.broadcast %cst_46 : f32 to vector<4x128xf32>
    %249 = arith.mulf %248, %247 : vector<4x128xf32>
    %250 = math.tanh %249 : vector<4x128xf32>
    %cst_47 = arith.constant 1.000000e+00 : f32
    %251 = vector.broadcast %cst_47 : f32 to vector<4x128xf32>
    %252 = arith.addf %251, %250 : vector<4x128xf32>
    %cst_48 = arith.constant 5.000000e-01 : f32
    %253 = vector.broadcast %cst_48 : f32 to vector<4x128xf32>
    %254 = arith.mulf %253, %252 : vector<4x128xf32>
    %255 = arith.mulf %242, %254 : vector<4x128xf32>
    %256 = tpu.concatenate %72, %133, %194, %255 in 0 : vector<4x128xf32>, vector<4x128xf32>, vector<4x128xf32>, vector<4x128xf32> -> vector<16x128xf32>
    %cst_49 = arith.constant dense<0.000000e+00> : vector<16x128xf32>
    %257 = tpu.matmul %4, %256, %cst_49 {dimension_numbers = #tpu.dot_dimension_numbers<[1], [0], [0], [1], [0, 0, 1, 1], [], []>} : vector<16x16xf32>, vector<16x128xf32>, vector<16x128xf32> -> vector<16x128xf32>
    %258 = vector.broadcast %5 : vector<16x1xf32> to vector<16x128xf32>
    %259 = arith.addf %257, %258 : vector<16x128xf32>
    %cst_50 = arith.constant dense<0.000000e+00> : vector<128xf32>
    %260 = vector.multi_reduction <add>, %259, %cst_50 [0] : vector<16x128xf32> to vector<128xf32>
    %261 = vector.shape_cast %260 : vector<128xf32> to vector<1x128xf32>
    %cst_51 = arith.constant 1.600000e+01 : f32
    %262 = vector.broadcast %cst_51 : f32 to vector<1x128xf32>
    %263 = arith.divf %261, %262 : vector<1x128xf32>
    %264 = vector.broadcast %263 : vector<1x128xf32> to vector<16x128xf32>
    %265 = arith.subf %259, %264 : vector<16x128xf32>
    %266 = arith.mulf %265, %265 : vector<16x128xf32>
    %cst_52 = arith.constant dense<0.000000e+00> : vector<128xf32>
    %267 = vector.multi_reduction <add>, %266, %cst_52 [0] : vector<16x128xf32> to vector<128xf32>
    %268 = vector.shape_cast %267 : vector<128xf32> to vector<1x128xf32>
    %cst_53 = arith.constant 1.600000e+01 : f32
    %269 = vector.broadcast %cst_53 : f32 to vector<1x128xf32>
    %270 = arith.divf %268, %269 : vector<1x128xf32>
    %271 = vector.broadcast %263 : vector<1x128xf32> to vector<16x128xf32>
    %272 = arith.subf %259, %271 : vector<16x128xf32>
    %cst_54 = arith.constant 9.99999997E-7 : f32
    %273 = vector.broadcast %cst_54 : f32 to vector<1x128xf32>
    %274 = arith.addf %270, %273 : vector<1x128xf32>
    %275 = math.rsqrt %274 : vector<1x128xf32>
    %276 = vector.broadcast %275 : vector<1x128xf32> to vector<16x128xf32>
    %277 = arith.mulf %272, %276 : vector<16x128xf32>
    %278 = vector.broadcast %6 : vector<16x1xf32> to vector<16x128xf32>
    %279 = arith.mulf %277, %278 : vector<16x128xf32>
    %280 = vector.broadcast %7 : vector<16x1xf32> to vector<16x128xf32>
    %281 = arith.addf %279, %280 : vector<16x128xf32>
    %282 = arith.mulf %281, %281 : vector<16x128xf32>
    %283 = arith.mulf %281, %282 : vector<16x128xf32>
    %cst_55 = arith.constant 4.471500e-02 : f32
    %284 = vector.broadcast %cst_55 : f32 to vector<16x128xf32>
    %285 = arith.mulf %284, %283 : vector<16x128xf32>
    %286 = arith.addf %281, %285 : vector<16x128xf32>
    %cst_56 = arith.constant 0.797884583 : f32
    %287 = vector.broadcast %cst_56 : f32 to vector<16x128xf32>
    %288 = arith.mulf %287, %286 : vector<16x128xf32>
    %289 = math.tanh %288 : vector<16x128xf32>
    %cst_57 = arith.constant 1.000000e+00 : f32
    %290 = vector.broadcast %cst_57 : f32 to vector<16x128xf32>
    %291 = arith.addf %290, %289 : vector<16x128xf32>
    %cst_58 = arith.constant 5.000000e-01 : f32
    %292 = vector.broadcast %cst_58 : f32 to vector<16x128xf32>
    %293 = arith.mulf %292, %291 : vector<16x128xf32>
    %294 = arith.mulf %281, %293 : vector<16x128xf32>
    %cst_59 = arith.constant dense<0.000000e+00> : vector<32x128xf32>
    %295 = tpu.matmul %8, %294, %cst_59 {dimension_numbers = #tpu.dot_dimension_numbers<[1], [0], [0], [1], [0, 0, 1, 1], [], []>} : vector<32x16xf32>, vector<16x128xf32>, vector<32x128xf32> -> vector<32x128xf32>
    %296 = vector.broadcast %9 : vector<32x1xf32> to vector<32x128xf32>
    %297 = arith.addf %295, %296 : vector<32x128xf32>
    %c0_60 = arith.constant 0 : index
    %c0_61 = arith.constant 0 : index
    %298 = vector.load %arg4[%c0_60, %c0_61] : memref<32x128xf32, #tpu.memory_space<vmem>>, vector<32x128xf32>
    tpu.vector_store %arg4[%c0_60, %c0_61], %297 {strides = array<i32>} : memref<32x128xf32, #tpu.memory_space<vmem>>, vector<32x128xf32>,
    %c0_62 = arith.constant 0 : index
    %c0_63 = arith.constant 0 : index
    %299 = vector.load %arg2[%c0_62, %c0_63] : memref<3x128xf32, #tpu.memory_space<vmem>>, vector<3x128xf32>
    %c0_64 = arith.constant 0 : index
    %c0_65 = arith.constant 0 : index
    %300 = vector.load %arg3[%c0_64, %c0_65] : memref<32x128xf32, #tpu.memory_space<vmem>>, vector<32x128xf32>
    %301 = vector.extract_strided_slice %299 {offsets = [0, 0], sizes = [1, 128], strides = [1, 1]} : vector<3x128xf32> to vector<1x128xf32>
    %cst_66 = arith.constant 5.000000e-01 : f32
    %302 = vector.broadcast %cst_66 : f32 to vector<1x128xf32>
    %303 = arith.addf %301, %302 : vector<1x128xf32>
    %cst_67 = arith.constant 3.125000e-02 : f32
    %304 = vector.broadcast %cst_67 : f32 to vector<1x128xf32>
    %305 = arith.mulf %303, %304 : vector<1x128xf32>
    %cst_68 = arith.constant 2.000000e+00 : f32
    %306 = vector.broadcast %cst_68 : f32 to vector<1x128xf32>
    %307 = arith.mulf %306, %305 : vector<1x128xf32>
    %cst_69 = arith.constant 1.000000e+00 : f32
    %308 = vector.broadcast %cst_69 : f32 to vector<1x128xf32>
    %309 = arith.subf %307, %308 : vector<1x128xf32>
    %310 = vector.extract_strided_slice %299 {offsets = [1, 0], sizes = [1, 128], strides = [1, 1]} : vector<3x128xf32> to vector<1x128xf32>
    %cst_70 = arith.constant 5.000000e-01 : f32
    %311 = vector.broadcast %cst_70 : f32 to vector<1x128xf32>
    %312 = arith.addf %310, %311 : vector<1x128xf32>
    %cst_71 = arith.constant 3.125000e-02 : f32
    %313 = vector.broadcast %cst_71 : f32 to vector<1x128xf32>
    %314 = arith.mulf %312, %313 : vector<1x128xf32>
    %cst_72 = arith.constant 2.000000e+00 : f32
    %315 = vector.broadcast %cst_72 : f32 to vector<1x128xf32>
    %316 = arith.mulf %315, %314 : vector<1x128xf32>
    %cst_73 = arith.constant 1.000000e+00 : f32
    %317 = vector.broadcast %cst_73 : f32 to vector<1x128xf32>
    %318 = arith.subf %316, %317 : vector<1x128xf32>
    %319 = vector.extract_strided_slice %299 {offsets = [2, 0], sizes = [1, 128], strides = [1, 1]} : vector<3x128xf32> to vector<1x128xf32>
    %320 = vector.extract_strided_slice %10 {offsets = [0, 0], sizes = [16, 1], strides = [1, 1]} : vector<16x2xf32> to vector<16x1xf32>
    %321 = vector.broadcast %320 : vector<16x1xf32> to vector<16x128xf32>
    %322 = vector.broadcast %309 : vector<1x128xf32> to vector<16x128xf32>
    %323 = arith.mulf %321, %322 : vector<16x128xf32>
    %324 = vector.extract_strided_slice %10 {offsets = [0, 1], sizes = [16, 1], strides = [1, 1]} : vector<16x2xf32> to vector<16x1xf32>
    %325 = vector.broadcast %324 : vector<16x1xf32> to vector<16x128xf32>
    %326 = vector.broadcast %318 : vector<1x128xf32> to vector<16x128xf32>
    %327 = arith.mulf %325, %326 : vector<16x128xf32>
    %328 = arith.addf %323, %327 : vector<16x128xf32>
    %cst_74 = arith.constant 6.28318548 : f32
    %329 = vector.broadcast %cst_74 : f32 to vector<16x128xf32>
    %330 = arith.mulf %329, %328 : vector<16x128xf32>
    %cst_75 = arith.constant 1.57079637 : f32
    %331 = vector.broadcast %cst_75 : f32 to vector<16x128xf32>
    %332 = arith.addf %330, %331 : vector<16x128xf32>
    %333 = tpu.concatenate %330, %332 in 0 : vector<16x128xf32>, vector<16x128xf32> -> vector<32x128xf32>
    %334 = math.sin %333 : vector<32x128xf32>
    %335 = vector.broadcast %319 : vector<1x128xf32> to vector<32x128xf32>
    %336 = arith.mulf %334, %335 : vector<32x128xf32>
    %337 = arith.addf %336, %300 : vector<32x128xf32>
    %c0_76 = arith.constant 0 : index
    %c0_77 = arith.constant 0 : index
    %338 = vector.load %arg5[%c0_76, %c0_77] : memref<32x128xf32, #tpu.memory_space<vmem>>, vector<32x128xf32>
    tpu.vector_store %arg5[%c0_76, %c0_77], %337 {strides = array<i32>} : memref<32x128xf32, #tpu.memory_space<vmem>>, vector<32x128xf32>,
    return
  }
}

</mosaic_0001>

<bundles_post_ra>
// kernel: tpu_custom_call.1
= control target key start
LH: loop header
LB: loop body
LE: loop exit
PB: predicated region body
PF: predicated region fallthrough
CT: control target
= control target key end

     0   :  { %11 = vsyncpa [#allocation3], 0  ;;  %s1948_s0 = inlined_call_operand.hbm [shape: f32[16,128], index: 0, kind: input, shape index: {}]   ;;  %s1949_s1 = inlined_call_operand.hbm [shape: f32[72,128], index: 1, kind: input, shape index: {}]   ;;  %s1950_s2 = inlined_call_operand.vmem [shape: f32[3,128], index: 2, kind: input, shape index: {}]   ;;  %s1951_s3 = inlined_call_operand.hbm [shape: f32[32,128], index: 3, kind: input, shape index: {}]   ;;  %s1952_s4 = inlined_call_operand.hbm [shape: f32[32,128], index: 4, kind: output, shape index: {0}]   ;;  %s1953_s5 = inlined_call_operand.hbm [shape: f32[32,128], index: 5, kind: output, shape index: {1}]  }
   0x1   :  { %12 = vsyncpa [#allocation6], 0 }
   0x2   :  { %13 = vsyncpa [#allocation4], 0 }
   0x3   :  { %14 = vsyncpa [#allocation10], 0  ;;  %s1388_s18 = smov [#allocation5]   ;;  %s1389_s20 = smov [#allocation2]  }
   0x4   :  { %s32_s19 = sshll.u32 %s1388_s18, 4  ;;  %s20_s21 = sshll.u32 %s1389_s20, 4  ;;  %s33_s19 = int_to_ptr.vmem [resolvable:$true] %s32_s19  ;;  %s1441_s21 = int_to_ptr.vmem [resolvable:$true] %s20_s21 }
   0x5   :  { %s1270_s24 = scalar_lea.hbm %s1949_s1, 1152 }
   0x6   :  { %p1271_p0 = scmp.ne.s32.totalorder %s1949_s1, %s1270_s24  ;;  %p1274_p1 = scmp.lt.u32.totalorder %s1270_s24, %s1949_s1 }
   0x8   :  { %p1276_p2 = pnand %p1274_p1, %p1271_p0 }
   0xa   :  { %1279 = shalt.err (!%p1276_p2)
}
   0xb   :  { %s1280_s29 = scalar_lea.vmem %s33_s19, 1152  ;;  %p1285_p4 = scmp.lt.s32.totalorder %s33_s19, %s33_s19 }
   0xc   :  { %p1281_p3 = scmp.ne.s32.totalorder %s33_s19, %s1280_s29  ;;  %p1286_p5 = scmp.lt.s32.totalorder %s1280_s29, %s1280_s29 }
   0xe   :  { %p1287_p6 = por %p1286_p5, %p1285_p4 }
  0x10   :  { %p1288_p7 = pnand %p1287_p6, %p1281_p3 }
  0x12   :  { %1291 = shalt.err (!%p1288_p7)
}
  0x13   :  { %s1390_s30 = smov 128   ;;  %s1391_s6 = smov 8  }
  0x14   :  { %38 = dma.hbm_to_vmem [thread:$0]  %s1949_s1, 1152, %s33_s19, [#allocation6], %s1390_s30, %s1390_s30, %s1391_s6  }
  0x15   :  { %s1292_s11 = scalar_lea.hbm %s1948_s0, 256 }
  0x16   :  { %p1293_p8 = scmp.ne.s32.totalorder %s1948_s0, %s1292_s11  ;;  %p1296_p9 = scmp.lt.u32.totalorder %s1292_s11, %s1948_s0 }
  0x18   :  { %p1298_p10 = pnand %p1296_p9, %p1293_p8 }
  0x1a   :  { %1301 = shalt.err (!%p1298_p10)
}
  0x1b   :  { %s1302_s16 = scalar_lea.vmem %s1441_s21, 256  ;;  %p1307_p12 = scmp.lt.s32.totalorder %s1441_s21, %s1441_s21 }
  0x1c   :  { %p1303_p11 = scmp.ne.s32.totalorder %s1441_s21, %s1302_s16  ;;  %p1308_p13 = scmp.lt.s32.totalorder %s1302_s16, %s1302_s16 }
  0x1e   :  { %p1309_p0 = por %p1308_p13, %p1307_p12 }
  0x20   :  { %p1310_p1 = pnand %p1309_p0, %p1303_p11 }
  0x22   :  { %1313 = shalt.err (!%p1310_p1)
}
  0x23   :  { %26 = dma.hbm_to_vmem [thread:$0]  %s1948_s0, 256, %s1441_s21, [#allocation3], %s1390_s30, %s1390_s30, %s1391_s6  }
  0x24   :  { %s1392_s18 = smov [#allocation7]   ;;  %s1314_s23 = scalar_lea.hbm %s1951_s3, 512 }
  0x25   :  { %s46_s19 = sshll.u32 %s1392_s18, 4  ;;  %p1315_p2 = scmp.ne.s32.totalorder %s1951_s3, %s1314_s23  ;;  %s47_s19 = int_to_ptr.vmem [resolvable:$true] %s46_s19 }
  0x26   :  { %p1318_p3 = scmp.lt.u32.totalorder %s1314_s23, %s1951_s3 }
  0x28   :  { %p1320_p4 = pnand %p1318_p3, %p1315_p2 }
  0x2a   :  { %1323 = shalt.err (!%p1320_p4)
}
  0x2b   :  { %s1324_s28 = scalar_lea.vmem %s47_s19, 512  ;;  %p1329_p6 = scmp.lt.s32.totalorder %s47_s19, %s47_s19 }
  0x2c   :  { %p1325_p5 = scmp.ne.s32.totalorder %s47_s19, %s1324_s28  ;;  %p1330_p7 = scmp.lt.s32.totalorder %s1324_s28, %s1324_s28 }
  0x2e   :  { %p1331_p8 = por %p1330_p7, %p1329_p6 }
  0x30   :  { %p1332_p9 = pnand %p1331_p8, %p1325_p5 }
  0x32   :  { %1335 = shalt.err (!%p1332_p9)
}
  0x33   :  { %52 = dma.hbm_to_vmem [thread:$0]  %s1951_s3, 512, %s47_s19, [#allocation6], %s1390_s30, %s1390_s30, %s1391_s6  }
  0x34   :  { %1380 = dma.done.wait [#allocation3], 256  }
  0x35   :  { %1381 = vsyncadd [#allocation3], 4294967040 }
  0x36   :  { %1382 = dma.done.wait [#allocation6], 1664  }
  0x37   :  { %1383 = vsyncadd [#allocation6], 4294965632  ;;  %v1393_v0 = vmov 0   ;;  %v1394_v1 = vmov 2   ;;  %v62_v2 = vld [vmem:[#allocation5] sm:$0xf]  ;;  %v78_v13 = vlaneseq }
  0x38   :  { %1214 = vset.pattern.permute.xlu0 %v1393_v0  ;;  %1216 = vset.pattern.permute.xlu1 %v1394_v1  ;;  %v1395_v3 = vmov 1   ;;  %v1396_v4 = vmov 3   ;;  %v1397_v5 = vmov 4   ;;  %v1398_v6 = vmov 5   ;;  %v63_v8 = vld [vmem:[#allocation5 + $0x8] sm:$0xff]  ;;  %v1495_v9 = vld [vmem:[#allocation5 + $0x10] sm:$0xff] }
  0x39   :  { %75 = vperm.xlu0 %1214, %v62_v2   ;;  %94 = vperm.xlu1 %1216, %v62_v2   ;;  %v1399_v7 = vmov 6   ;;  %vm346_vm0 = vcmask 130048   ;;  %v1400_v10 = vmov 16   ;;  %v1401_v11 = vmov 17   ;;  %v71_v17 = vld [vmem:[#allocation2] sm:$0xff]  ;;  %v72_v18 = vld [vmem:[#allocation2 + $0x8] sm:$0xff] }
  0x3a   :  { %1154 = vmatprep.mubr.msk.f32.mxu0 %vm346_vm0, %v63_v8  ;;  %v1402_v12 = vmov 18   ;;  %v79_v14 = vshrl.u32 %v78_v13, 7  ;;  %v69_v23 = vld [vmem:[#allocation5 + $0x38] sm:$0xff]  ;;  %vm118_vm1 = vcmask 1043456  }
  0x3c   :  { %v1501_v15 = vsub.s32 0, %v79_v14  ;;  %v162_v16 = vsub.s32 4, %v79_v14  ;;  %v1504_v19 = vsub.s32 2, %v79_v14  ;;  %v173_v20 = vsub.s32 6, %v79_v14 }
  0x3d   :  { %1215 = vset.pattern.permute.xlu0 %v1395_v3  ;;  %1217 = vset.pattern.permute.xlu1 %v1396_v4  ;;  %v1506_v21 = vsub.s32 1, %v79_v14  ;;  %v167_v22 = vsub.s32 5, %v79_v14  ;;  %v109_v24 = vsub.s32 3, %v79_v14  ;;  %v179_v25 = vsub.s32 7, %v79_v14 }
  0x3e   :  { %84 = vperm.xlu0 %1215, %v62_v2   ;;  %104 = vperm.xlu1 %1217, %v62_v2   ;;  %v81_v26 = vrot.slane %v71_v17, %v1501_v15  ;;  %v163_v27 = vrot.slane %v71_v17, %v162_v16  ;;  %v219_v28 = vrot.slane %v72_v18, %v1501_v15 }
  0x3f   :  { %v275_v29 = vrot.slane %v72_v18, %v162_v16  ;;  %v100_v32 = vrot.slane %v71_v17, %v1504_v19  ;;  %v174_v33 = vrot.slane %v71_v17, %v173_v20  ;;  %v230_v34 = vrot.slane %v72_v18, %v1504_v19 }
  0x40   :  { %v286_v35 = vrot.slane %v72_v18, %v173_v20  ;;  %v90_v36 = vrot.slane %v71_v17, %v1506_v21  ;;  %v168_v37 = vrot.slane %v71_v17, %v167_v22  ;;  %v224_v38 = vrot.slane %v72_v18, %v1506_v21 }
  0x41   :  { %v280_v39 = vrot.slane %v72_v18, %v167_v22  ;;  %v110_v40 = vrot.slane %v71_v17, %v109_v24  ;;  %v180_v41 = vrot.slane %v71_v17, %v179_v25  ;;  %v236_v42 = vrot.slane %v72_v18, %v109_v24 }
  0x42   :  { %1218 = vset.pattern.permute.xlu1 %v1397_v5  ;;  %1219 = vset.pattern.permute.xlu0 %v1398_v6  ;;  %v292_v43 = vrot.slane %v72_v18, %v179_v25 }
  0x43   :  { %114 = vperm.xlu1 %1218, %v62_v2   ;;  %142 = vperm.xlu0 %1219, %v62_v2  }
  0x47   :  { %1220 = vset.pattern.permute.xlu1 %v1399_v7  ;;  %1222 = vset.pattern.permute.xlu0 %v1400_v10 }
  0x48   :  { %147 = vperm.xlu1 %1220, %v62_v2   ;;  %343 = vperm.xlu0 %1222, %v1495_v9  }
  0x4c   :  { %1221 = vset.pattern.permute.xlu1 %v1400_v10  ;;  %1224 = vset.pattern.permute.xlu0 %v1402_v12 }
  0x4d   :  { %338 = vperm.xlu1 %1221, %v63_v8   ;;  %462 = vperm.xlu0 %1224, %v63_v8  }
  0x51   :  { %1223 = vset.pattern.permute.xlu1 %v1401_v11  ;;  %1227 = vset.pattern.permute.xlu0 %v1393_v0 }
  0x52   :  { %452 = vperm.xlu1 %1223, %v63_v8  }
  0x56   :  { %456 = vperm.xlu1 %1223, %v1495_v9  }
  0x5a   :  { %1225 = vset.pattern.permute.xlu1 %v1402_v12 }
  0x5b   :  { %466 = vperm.xlu1 %1225, %v1495_v9  }
  0x5f   :  { %1226 = vset.pattern.permute.xlu1 %v1393_v0 }
  0x60   :  { %617 = vperm.xlu1 %1226, %v69_v23  }
  0x64   :  { %1228 = vset.pattern.permute.xlu1 %v1395_v3 }
  0x65   :  { %632 = vperm.xlu1 %1228, %v69_v23  }
  0xb8   :  { %v76_v30 = vpop.permute.xlu0 %75  ;;  %v95_v31 = vpop.permute.xlu1 %94 }
  0xb9   :  { %v82_v44 = vmul.f32 %v81_v26, %v76_v30  ;;  %v164_v45 = vmul.f32 %v163_v27, %v76_v30  ;;  %v220_v46 = vmul.f32 %v219_v28, %v76_v30  ;;  %v276_v47 = vmul.f32 %v275_v29, %v76_v30 }
  0xba   :  { %v101_v48 = vmul.f32 %v100_v32, %v95_v31  ;;  %v175_v49 = vmul.f32 %v174_v33, %v95_v31  ;;  %v231_v50 = vmul.f32 %v230_v34, %v95_v31  ;;  %v287_v51 = vmul.f32 %v286_v35, %v95_v31 }
  0xbd   :  { %v85_v52 = vpop.permute.xlu0 %84  ;;  %v105_v53 = vpop.permute.xlu1 %104 }
  0xbe   :  { %v91_v54 = vmul.f32 %v90_v36, %v85_v52  ;;  %v169_v55 = vmul.f32 %v168_v37, %v85_v52  ;;  %v225_v56 = vmul.f32 %v224_v38, %v85_v52  ;;  %v281_v57 = vmul.f32 %v280_v39, %v85_v52 }
  0xbf   :  { %v111_v58 = vmul.f32 %v110_v40, %v105_v53  ;;  %v181_v59 = vmul.f32 %v180_v41, %v105_v53  ;;  %v237_v60 = vmul.f32 %v236_v42, %v105_v53  ;;  %v293_v61 = vmul.f32 %v292_v43, %v105_v53 }
  0xc0   :  { %v92_v62 = vadd.f32 %v91_v54, %v82_v44  ;;  %v170_v63 = vadd.f32 %v169_v55, %v164_v45  ;;  %v226_v0 = vadd.f32 %v225_v56, %v220_v46  ;;  %v282_v1 = vadd.f32 %v281_v57, %v276_v47 }
  0xc2   :  { %v102_v2 = vadd.f32 %v101_v48, %v92_v62  ;;  %v176_v4 = vadd.f32 %v175_v49, %v170_v63  ;;  %v232_v5 = vadd.f32 %v231_v50, %v226_v0  ;;  %v288_v6 = vadd.f32 %v287_v51, %v282_v1  ;;  %v115_v7 = vpop.permute.xlu1 %114 }
  0xc4   :  { %v112_v8 = vadd.f32 %v111_v58, %v102_v2  ;;  %v182_v11 = vadd.f32 %v181_v59, %v176_v4  ;;  %v238_v12 = vadd.f32 %v237_v60, %v232_v5  ;;  %v294_v13 = vadd.f32 %v293_v61, %v288_v6 }
  0xc6   :  { %v117_v14 = vadd.f32 %v115_v7, %v112_v8  ;;  %v183_v16 = vadd.f32 %v182_v11, %v115_v7  ;;  %v239_v17 = vadd.f32 %v238_v12, %v115_v7  ;;  %v295_v18 = vadd.f32 %v294_v13, %v115_v7 }
  0xc8   :  { %v119_v20 = vsel %vm118_vm1, %v117_v14, 0.0  ;;  %v184_v22 = vsel %vm118_vm1, %v183_v16, 0.0  ;;  %v240_v23 = vsel %vm118_vm1, %v239_v17, 0.0  ;;  %v296_v24 = vsel %vm118_vm1, %v295_v18, 0.0 }
  0xc9   :  { %v120_v25 = vrot.slane %v119_v20, 4  ;;  %v185_v26 = vrot.slane %v184_v22, 4  ;;  %v241_v27 = vrot.slane %v240_v23, 4  ;;  %v297_v28 = vrot.slane %v296_v24, 4 }
  0xcb   :  { %v121_v29 = vadd.f32 %v120_v25, %v119_v20  ;;  %v186_v30 = vadd.f32 %v185_v26, %v184_v22  ;;  %v242_v31 = vadd.f32 %v241_v27, %v240_v23  ;;  %v298_v32 = vadd.f32 %v297_v28, %v296_v24 }
  0xcd   :  { %v122_v33 = vrot.slane %v121_v29, 2  ;;  %v187_v34 = vrot.slane %v186_v30, 2  ;;  %v243_v35 = vrot.slane %v242_v31, 2  ;;  %v299_v36 = vrot.slane %v298_v32, 2 }
  0xcf   :  { %v123_v37 = vadd.f32 %v122_v33, %v121_v29  ;;  %v188_v38 = vadd.f32 %v187_v34, %v186_v30  ;;  %v244_v39 = vadd.f32 %v243_v35, %v242_v31  ;;  %v300_v40 = vadd.f32 %v299_v36, %v298_v32 }
  0xd1   :  { %v124_v41 = vrot.slane %v123_v37, 1  ;;  %v189_v42 = vrot.slane %v188_v38, 1  ;;  %v245_v43 = vrot.slane %v244_v39, 1  ;;  %v301_v44 = vrot.slane %v300_v40, 1 }
  0xd3   :  { %v125_v45 = vadd.f32 %v124_v41, %v123_v37  ;;  %v190_v46 = vadd.f32 %v189_v42, %v188_v38  ;;  %v246_v47 = vadd.f32 %v245_v43, %v244_v39  ;;  %v302_v48 = vadd.f32 %v301_v44, %v300_v40  ;;  %v143_v40 = vpop.permute.xlu0 %142 }
  0xd5   :  { %v127_v49 = vmul.f32 0.25, %v125_v45  ;;  %v191_v50 = vmul.f32 0.25, %v190_v46  ;;  %v247_v51 = vmul.f32 0.25, %v246_v47  ;;  %v303_v52 = vmul.f32 0.25, %v302_v48  ;;  %v148_v45 = vpop.permute.xlu1 %147 }
  0xd7   :  { %v128_v53 = vsub.f32 %v117_v14, %v127_v49  ;;  %v192_v54 = vsub.f32 %v183_v16, %v191_v50  ;;  %v248_v55 = vsub.f32 %v239_v17, %v247_v51  ;;  %v304_v56 = vsub.f32 %v295_v18, %v303_v52 }
  0xd9   :  { %v129_v57 = vmul.f32 %v128_v53, %v128_v53  ;;  %v193_v58 = vmul.f32 %v192_v54, %v192_v54  ;;  %v249_v59 = vmul.f32 %v248_v55, %v248_v55  ;;  %v305_v60 = vmul.f32 %v304_v56, %v304_v56 }
  0xdb   :  { %v130_v61 = vsel %vm118_vm1, %v129_v57, 0.0  ;;  %v194_v62 = vsel %vm118_vm1, %v193_v58, 0.0  ;;  %v250_v63 = vsel %vm118_vm1, %v249_v59, 0.0  ;;  %v306_v0 = vsel %vm118_vm1, %v305_v60, 0.0 }
  0xdc   :  { %v131_v1 = vrot.slane %v130_v61, 4  ;;  %v195_v2 = vrot.slane %v194_v62, 4  ;;  %v251_v4 = vrot.slane %v250_v63, 4  ;;  %v307_v5 = vrot.slane %v306_v0, 4 }
  0xde   :  { %v132_v6 = vadd.f32 %v131_v1, %v130_v61  ;;  %v196_v7 = vadd.f32 %v195_v2, %v194_v62  ;;  %v252_v8 = vadd.f32 %v251_v4, %v250_v63  ;;  %v308_v11 = vadd.f32 %v307_v5, %v306_v0 }
  0xe0   :  { %v133_v12 = vrot.slane %v132_v6, 2  ;;  %v197_v13 = vrot.slane %v196_v7, 2  ;;  %v253_v14 = vrot.slane %v252_v8, 2  ;;  %v309_v16 = vrot.slane %v308_v11, 2 }
  0xe2   :  { %v134_v17 = vadd.f32 %v133_v12, %v132_v6  ;;  %v198_v18 = vadd.f32 %v197_v13, %v196_v7  ;;  %v254_v20 = vadd.f32 %v253_v14, %v252_v8  ;;  %v310_v22 = vadd.f32 %v309_v16, %v308_v11 }
  0xe4   :  { %v135_v23 = vrot.slane %v134_v17, 1  ;;  %v199_v24 = vrot.slane %v198_v18, 1  ;;  %v255_v25 = vrot.slane %v254_v20, 1  ;;  %v311_v26 = vrot.slane %v310_v22, 1 }
  0xe6   :  { %v136_v27 = vadd.f32 %v135_v23, %v134_v17  ;;  %v200_v28 = vadd.f32 %v199_v24, %v198_v18  ;;  %v256_v29 = vadd.f32 %v255_v25, %v254_v20  ;;  %v312_v30 = vadd.f32 %v311_v26, %v310_v22 }
  0xe8   :  { %v137_v31 = vmul.f32 0.25, %v136_v27  ;;  %v201_v32 = vmul.f32 0.25, %v200_v28  ;;  %v257_v33 = vmul.f32 0.25, %v256_v29  ;;  %v313_v34 = vmul.f32 0.25, %v312_v30 }
  0xea   :  { %v138_v35 = vadd.f32 1e-06, %v137_v31  ;;  %v202_v36 = vadd.f32 1e-06, %v201_v32  ;;  %v258_v37 = vadd.f32 1e-06, %v257_v33 }
  0xeb   :  { %v314_v38 = vadd.f32 1e-06, %v313_v34 }
  0xec   :  { %1232 = vrsqrt.f32 %v138_v35 }
  0xed   :  { %1234 = vrsqrt.f32 %v202_v36 }
  0xee   :  { %1236 = vrsqrt.f32 %v258_v37 }
  0xef   :  { %1238 = vrsqrt.f32 %v314_v38 }
  0xf6   :  { %v1233_v39 = vpop.eup %1232 }
  0xf7   :  { %v1235_v41 = vpop.eup %1234  ;;  %v140_v42 = vmul.f32 %v1233_v39, %v128_v53 }
  0xf8   :  { %v1237_v43 = vpop.eup %1236  ;;  %v204_v44 = vmul.f32 %v1235_v41, %v192_v54  ;;  %v1529_v41 = vpop.permute.xlu1 %338 }
  0xf9   :  { %v1239_v46 = vpop.eup %1238  ;;  %v260_v47 = vmul.f32 %v1237_v43, %v248_v55  ;;  %v145_v48 = vmul.f32 %v143_v40, %v140_v42  ;;  %v65_v43 = vld [vmem:[#allocation5 + $0x18] sm:$0xff] }
  0xfa   :  { %v316_v49 = vmul.f32 %v1239_v46, %v304_v56  ;;  %v205_v50 = vmul.f32 %v204_v44, %v143_v40  ;;  %v1533_v44 = vld [vmem:[#allocation5 + $0x20] sm:$0xff]  ;;  %1161 = vmatprep.mubr.msk.f32.mxu1 %vm346_vm0, %v65_v43 }
  0xfb   :  { %v261_v51 = vmul.f32 %v260_v47, %v143_v40  ;;  %v150_v52 = vadd.f32 %v148_v45, %v145_v48  ;;  %v1543_v47 = vld [vmem:[#allocation5 + $0x30] sm:$0xff] }
  0xfc   :  { %v317_v57 = vmul.f32 %v316_v49, %v143_v40  ;;  %v206_v58 = vadd.f32 %v205_v50, %v148_v45  ;;  %v70_v40 = vld [vmem:[#allocation5 + $0x40] sm:$0xff]  ;;  %v1531_v42 = vpop.permute.xlu1 %452 }
  0xfd   :  { %v151_v59 = vmul.f32 %v150_v52, %v150_v52  ;;  %v262_v60 = vadd.f32 %v261_v51, %v148_v45  ;;  %636 = vperm.xlu1 %1228, %v70_v40   ;;  %622 = vperm.xlu0 %1227, %v70_v40  }
  0xfe   :  { %v207_v61 = vmul.f32 %v206_v58, %v206_v58  ;;  %v318_v62 = vadd.f32 %v317_v57, %v148_v45 }
  0xff   :  { %v152_v63 = vmul.f32 %v151_v59, %v150_v52  ;;  %v263_v0 = vmul.f32 %v262_v60, %v262_v60 }
 0x100   :  { %v208_v1 = vmul.f32 %v207_v61, %v206_v58  ;;  %v319_v53 = vmul.f32 %v318_v62, %v318_v62  ;;  %v1535_v45 = vpop.permute.xlu1 %456 }
 0x101   :  { %v153_v2 = vmul.f32 0.044715, %v152_v63  ;;  %v264_v54 = vmul.f32 %v263_v0, %v262_v60  ;;  %1230 = vset.pattern.permute.xlu1 %v1400_v10  ;;  %1229 = vset.pattern.permute.xlu0 %v1400_v10  ;;  %v1550_v10 = vld [vmem:[%s1950_s2] sm:$0x7]  ;;  %s1409_s2 = smov [#allocation9]  }
 0x102   :  { %v209_v4 = vmul.f32 0.044715, %v208_v1  ;;  %v320_v5 = vmul.f32 %v319_v53, %v318_v62  ;;  %496 = vperm.xlu1 %1230, %v1533_v44   ;;  %491 = vperm.xlu0 %1229, %v65_v43   ;;  %v611_v48 = vadd.f32 0.5, %v1550_v10  ;;  %s1100_s7 = sshll.u32 %s1409_s2, 4  ;;  %s1101_s7 = int_to_ptr.vmem [resolvable:$true] %s1100_s7 }
 0x103   :  { %v265_v55 = vmul.f32 0.044715, %v264_v54  ;;  %v154_v6 = vadd.f32 %v153_v2, %v150_v52  ;;  %s1336_s8 = scalar_lea.vmem %s1101_s7, 512  ;;  %p1341_p11 = scmp.lt.s32.totalorder %s1101_s7, %s1101_s7 }
 0x104   :  { %v321_v56 = vmul.f32 0.044715, %v320_v5  ;;  %v210_v7 = vadd.f32 %v209_v4, %v206_v58  ;;  %v1541_v46 = vpop.permute.xlu1 %466  ;;  %v612_v50 = vmul.f32 0.03125, %v611_v48  ;;  %p1337_p10 = scmp.ne.s32.totalorder %s1101_s7, %s1336_s8  ;;  %p1342_p12 = scmp.lt.s32.totalorder %s1336_s8, %s1336_s8 }
 0x105   :  { %v155_v8 = vmul.f32 0.7978846, %v154_v6  ;;  %v266_v11 = vadd.f32 %v265_v55, %v262_v60 }
 0x106   :  { %v211_v12 = vmul.f32 0.7978846, %v210_v7  ;;  %v322_v13 = vadd.f32 %v321_v56, %v318_v62  ;;  %506 = vperm.xlu0 %1229, %v1543_v47   ;;  %v613_v51 = vmul.f32 2.0, %v612_v50  ;;  %v344_v56 = vpop.permute.xlu0 %343  ;;  %p1343_p13 = por %p1342_p12, %p1341_p11 }
 0x107   :  { %1240 = vtanh.f32 %v155_v8  ;;  %v267_v14 = vmul.f32 0.7978846, %v266_v11  ;;  %v1403_v8 = vmov 683565275  }
 0x108   :  { %1242 = vtanh.f32 %v211_v12  ;;  %v323_v16 = vmul.f32 0.7978846, %v322_v13  ;;  %v618_v49 = vpop.permute.xlu1 %617  ;;  %v1404_v12 = vmov 2475754826   ;;  %p1344_p0 = pnand %p1343_p13, %p1337_p10 }
 0x109   :  { %1244 = vtanh.f32 %v267_v14  ;;  %v1405_v14 = vmov 2131351028  }
 0x10a   :  { %1246 = vtanh.f32 %v323_v16  ;;  %1231 = vset.pattern.permute.xlu0 %v1395_v3  ;;  %v1587_v48 = vpop.permute.xlu0 %462 }
 0x10c   :  { %v633_v57 = vpop.permute.xlu1 %632 }
 0x111   :  { %v1241_v17 = vpop.eup %1240 }
 0x112   :  { %v1243_v18 = vpop.eup %1242  ;;  %v157_v20 = vadd.f32 1.0, %v1241_v17  ;;  %v1406_v17 = vmov 2102212464  }
 0x113   :  { %v1245_v22 = vpop.eup %1244  ;;  %v213_v23 = vadd.f32 1.0, %v1243_v18 }
 0x114   :  { %v1247_v24 = vpop.eup %1246  ;;  %v269_v25 = vadd.f32 1.0, %v1245_v22  ;;  %v158_v26 = vmul.f32 0.5, %v157_v20  ;;  %v1407_v20 = vmov 920167782  }
 0x115   :  { %v214_v27 = vmul.f32 0.5, %v213_v23  ;;  %v325_v28 = vadd.f32 1.0, %v1247_v24 }
 0x116   :  { %v270_v30 = vmul.f32 0.5, %v269_v25  ;;  %v159_v32 = vmul.f32 %v158_v26, %v150_v52  ;;  %v1123_v52 = vadd.f32 -1.0, %v613_v51 }
 0x117   :  { %v215_v29 = vmul.f32 %v214_v27, %v206_v58  ;;  %v326_v31 = vmul.f32 0.5, %v325_v28 }
 0x118   :  { %v271_v35 = vmul.f32 %v270_v30, %v262_v60  ;;  %v1555_v58 = vrot.slane %v1123_v52, %v1501_v15  ;;  %v1558_v59 = vrot.slane %v1123_v52, %v1506_v21 }
 0x119   :  { %v327_v33 = vmul.f32 %v326_v31, %v318_v62  ;;  %v329_v34 = vrot.slane %v215_v29, 4 }
 0x11a   :  { %v629_v60 = vmul.f32 %v1555_v58, %v618_v49  ;;  %v643_v61 = vmul.f32 %v1558_v59, %v633_v57 }
 0x11b   :  { %v332_v36 = vrot.slane %v327_v33, 4  ;;  %v334_v37 = vsel %vm118_vm1, %v159_v32, %v329_v34  ;;  %v1408_v33 = vmov 1326507024  }
 0x11c   :  { %v645_v62 = vadd.f32 %v643_v61, %v629_v60 }
 0x11d   :  { %v335_v38 = vsel %vm118_vm1, %v271_v35, %v332_v36 }
 0x11e   :  { %v1167_v39 = vpack.c.bf16 %v335_v38, %v334_v37  ;;  %v1562_v63 = vmul.f32 6.2831855, %v645_v62 }
 0x120   :  { %1168 = vmatprep.subr.bf16.mxu0 %v1167_v39  ;;  %v654_v0 = vand.u32 2139095040, %v1562_v63  ;;  %v651_v3 = vand.u32 2147483647, %v1562_v63  ;;  %v1567_v2 = vadd.f32 1.5707964, %v1562_v63  ;;  %vm653_vm1 = vcmp.lt.s32.totalorder %v1562_v63, 0 }
 0x121   :  { %1170 = vmatpush3.bf16.msra.mxu0 %v1167_v39 }
 0x122   :  { %v655_v1 = vshrl.u32 %v654_v0, 23  ;;  %v658_v15 = vand.u32 8388607, %v651_v3  ;;  %v862_v5 = vand.u32 2139095040, %v1567_v2 }
 0x124   :  { %1155 = vmatmul.mubr.msk.f32.vlgmr.msra.gmra.mrb[0].mxu0 %vm346_vm0, %v1495_v9  ;;  %v1539_v9 = vld [vmem:[#allocation5 + $0x28] sm:$0xff]  ;;  %v1124_v53 = vadd.s32 4294967169, %v655_v1  ;;  %v659_v54 = vor.u32 8388608, %v658_v15  ;;  %v863_v24 = vshrl.u32 %v862_v5, 23 }
 0x125   :  { %501 = vperm.xlu1 %1230, %v1539_v9  }
 0x126   :  { %v661_v21 = vadd.s32 1, %v1124_v53  ;;  %v699_v23 = vshll.u32 %v659_v54, 8  ;;  %v1132_v15 = vadd.s32 4294967169, %v863_v24 }
 0x128   :  { %vm662_vm2 = vcmp.gt.s32.totalorder %v661_v21, 0 }
 0x129   :  { %v663_v4 = vsel %vm662_vm2, %v661_v21, 0 }
 0x12a   :  { %v664_v55 = vshrl.u32 %v663_v4, 5  ;;  %v665_v6 = vand.u32 31, %v663_v4 }
 0x12c   :  { %v666_v7 = vsub.s32 32, %v665_v6  ;;  %v668_v11 = vshll.u32 %v1403_v8, %v665_v6  ;;  %v671_v13 = vshll.u32 %v1404_v12, %v665_v6  ;;  %v674_v16 = vshll.u32 %v1405_v14, %v665_v6 }
 0x12d   :  { %v677_v18 = vshll.u32 %v1406_v17, %v665_v6  ;;  %v680_v22 = vshll.u32 %v1407_v20, %v665_v6  ;;  %vm683_vm3 = vcmp.lt.s32.totalorder %v664_v55, 1  ;;  %vm685_vm4 = vcmp.lt.s32.totalorder %v664_v55, 3 }
 0x12e   :  { %v669_v26 = vshrl.u32 %v1404_v12, %v666_v7  ;;  %v672_v27 = vshrl.u32 %v1405_v14, %v666_v7  ;;  %v675_v28 = vshrl.u32 %v1406_v17, %v666_v7  ;;  %v667_v31 = vshrl.u32 %v1403_v8, %v666_v7 }
 0x12f   :  { %v678_v32 = vshrl.u32 %v1407_v20, %v666_v7  ;;  %v681_v34 = vshrl.u32 %v1408_v33, %v666_v7  ;;  %vm686_vm5 = vcmp.lt.s32.totalorder %v664_v55, 4  ;;  %vm684_vm6 = vcmp.lt.s32.totalorder %v664_v55, 2 }
 0x130   :  { %v670_v36 = vor.u32 %v669_v26, %v668_v11  ;;  %v673_v37 = vor.u32 %v672_v27, %v671_v13  ;;  %v676_v38 = vor.u32 %v675_v28, %v674_v16 }
 0x131   :  { %v679_v39 = vor.u32 %v678_v32, %v677_v18  ;;  %v682_v40 = vor.u32 %v681_v34, %v680_v22  ;;  %v869_v22 = vadd.s32 1, %v1132_v15 }
 0x132   :  { %v688_v49 = vsel %vm686_vm5, %v676_v38, 2102212464  ;;  %v691_v50 = vsel %vm683_vm3, %v670_v36, %v673_v37  ;;  %v687_v51 = vsel %vm683_vm3, %v667_v31, %v670_v36 }
 0x133   :  { %v692_v52 = vsel %vm686_vm5, %v679_v39, 920167782  ;;  %v696_v57 = vsel %vm686_vm5, %v682_v40, 1326507024  ;;  %v689_v61 = vsel %vm685_vm4, %v673_v37, %v688_v49  ;;  %vm870_vm8 = vcmp.gt.s32.totalorder %v869_v22, 0 }
 0x134   :  { %v693_v62 = vsel %vm685_vm4, %v676_v38, %v692_v52  ;;  %v697_v0 = vsel %vm685_vm4, %v679_v39, %v696_v57 }
 0x135   :  { %v694_v1 = vsel %vm684_vm6, %v691_v50, %v693_v62 }
 0x136   :  { %v1598_v7 = vmul.u32.u64.low %v699_v23, %v694_v1  ;;  %v1599_v11 = vmul.u32.u64.high %v699_v23, %v694_v1, %v1598_v7 }
 0x138   :  { %v709_v27 = vadd.s32 1, %v1599_v11 }
 0x17c   :  { %v637_v5 = vpop.permute.xlu1 %636  ;;  %v623_v6 = vpop.permute.xlu0 %622 }
 0x17d   :  { %v644_v13 = vmul.f32 %v1558_v59, %v637_v5  ;;  %v630_v18 = vmul.f32 %v1555_v58, %v623_v6 }
 0x17f   :  { %v646_v24 = vadd.f32 %v644_v13, %v630_v18 }
 0x1f7   :  { %v1156_v25 = vpop.f32.mrb[0].mxu0 }
 0x1f8   :  { %v1580_v29 = vadd.f32 %v1156_v25, %v344_v56  ;;  %v417_v30 = vpop.f32.mrb[1].mxu0  ;;  %v690_v56 = vsel %vm684_vm6, %v687_v51, %v689_v61 }
 0x1f9   :  { %v418_v35 = vadd.f32 %v417_v30, %v1529_v41  ;;  %v695_v41 = vsel %vm683_vm3, %v673_v37, %v676_v38  ;;  %v706_v26 = vmul.u32 %v699_v23, %v690_v56  ;;  %v1605_v30 = vmul.f32 6.2831855, %v646_v24 }
 0x1fa   :  { %v698_v53 = vsel %vm684_vm6, %v695_v41, %v697_v0  ;;  %v1613_v37 = vsel %vm870_vm8, %v869_v22, 0  ;;  %v859_v22 = vand.u32 2147483647, %v1567_v2  ;;  %vm1702_vm3 = vcmp.le.f32.partialorder %v651_v3, 0.7853982 }
 0x1fb   :  { %v426_v43 = vadd.f32 %v1580_v29, %v418_v35  ;;  %v1594_v54 = vmul.u32.u64.low %v699_v23, %v698_v53  ;;  %v1595_v4 = vmul.u32.u64.high %v699_v23, %v698_v53, %v1594_v54  ;;  %v1609_v59 = vadd.f32 1.5707964, %v1605_v30 }
 0x1fc   :  { %v755_v58 = vand.u32 2147483647, %v1605_v30  ;;  %v758_v23 = vand.u32 2139095040, %v1605_v30  ;;  %v1631_v61 = vand.u32 31, %v1613_v37 }
 0x1fd   :  { %v427_v60 = vrot.slane %v426_v43, 4  ;;  %vm708_vm7 = vc.u32 %v1595_v4, %v1598_v7  ;;  %v966_v40 = vand.u32 2139095040, %v1609_v59  ;;  %v707_v5 = vadd.s32 %v1598_v7, %v1595_v4 }
 0x1fe   :  { %v710_v55 = vsel %vm708_vm7, %v709_v27, %v1599_v11  ;;  %v759_v38 = vshrl.u32 %v758_v23, 23  ;;  %v762_v39 = vand.u32 8388607, %v755_v58 }
 0x1ff   :  { %v428_v21 = vadd.f32 %v427_v60, %v426_v43  ;;  %v711_v32 = vadd.s32 %v710_v55, %v706_v26  ;;  %v967_v52 = vshrl.u32 %v966_v40, 23 }
 0x200   :  { %v1128_v51 = vadd.s32 4294967169, %v759_v38 }
 0x201   :  { %v429_v16 = vrot.slane %v428_v21, 2  ;;  %v712_v36 = vadd.s32 536870912, %v711_v32  ;;  %v1136_v0 = vadd.s32 4294967169, %v967_v52 }
 0x202   :  { %v765_v62 = vadd.s32 1, %v1128_v51 }
 0x203   :  { %v430_v25 = vadd.f32 %v429_v16, %v428_v21  ;;  %v1623_v50 = vshrl.u32 %v712_v36, 30  ;;  %v1634_v21 = vsub.s32 32, %v1631_v61  ;;  %v973_v11 = vadd.s32 1, %v1136_v0 }
 0x204   :  { %vm766_vm9 = vcmp.gt.s32.totalorder %v765_v62, 0 }
 0x205   :  { %v431_v28 = vrot.slane %v430_v25, 1  ;;  %v714_v60 = vshll.u32 %v1623_v50, 30  ;;  %v767_v54 = vsel %vm766_vm9, %v765_v62, 0  ;;  %vm974_vm15 = vcmp.gt.s32.totalorder %v973_v11, 0 }
 0x206   :  { %v769_v6 = vand.u32 31, %v767_v54  ;;  %v768_v18 = vshrl.u32 %v767_v54, 5 }
 0x207   :  { %v432_v31 = vadd.f32 %v431_v28, %v430_v25  ;;  %v715_v1 = vsub.s32 %v711_v32, %v714_v60 }
 0x208   :  { %v770_v25 = vsub.s32 32, %v769_v6  ;;  %v772_v26 = vshll.u32 %v1403_v8, %v769_v6  ;;  %v775_v24 = vshll.u32 %v1404_v12, %v769_v6  ;;  %v778_v27 = vshll.u32 %v1405_v14, %v769_v6 }
 0x209   :  { %v434_v34 = vmul.f32 0.0625, %v432_v31  ;;  %v717_v15 = vsub.s32 0, %v715_v1  ;;  %v781_v4 = vshll.u32 %v1406_v17, %v769_v6  ;;  %v784_v7 = vshll.u32 %v1407_v20, %v769_v6 }
 0x20a   :  { %v771_v31 = vshrl.u32 %v1403_v8, %v770_v25  ;;  %v773_v32 = vshrl.u32 %v1404_v12, %v770_v25  ;;  %v776_v23 = vshrl.u32 %v1405_v14, %v770_v25  ;;  %v785_v40 = vshrl.u32 %v1408_v33, %v770_v25 }
 0x20b   :  { %v1618_v43 = vsub.f32 %v418_v35, %v434_v34  ;;  %v1621_v49 = vsub.f32 %v1580_v29, %v434_v34  ;;  %v763_v35 = vor.u32 8388608, %v762_v39  ;;  %v1125_v16 = vmin.u32 %v717_v15, %v715_v1 }
 0x20c   :  { %v779_v34 = vshrl.u32 %v1406_v17, %v770_v25  ;;  %v782_v39 = vshrl.u32 %v1407_v20, %v770_v25  ;;  %v774_v51 = vor.u32 %v773_v32, %v772_v26  ;;  %v777_v52 = vor.u32 %v776_v23, %v775_v24 }
 0x20d   :  { %v437_v41 = vmul.f32 %v1618_v43, %v1618_v43  ;;  %v438_v57 = vmul.f32 %v1621_v49, %v1621_v49  ;;  %v1637_v56 = vshll.u32 %v763_v35, 8  ;;  %v719_v55 = vclz %v1125_v16 }
 0x20e   :  { %vm787_vm10 = vcmp.lt.s32.totalorder %v768_v18, 1  ;;  %v783_v60 = vor.u32 %v782_v39, %v781_v4  ;;  %v786_v35 = vor.u32 %v785_v40, %v784_v7  ;;  %vm788_vm12 = vcmp.lt.s32.totalorder %v768_v18, 2 }
 0x20f   :  { %v439_v29 = vadd.f32 %v438_v57, %v437_v41  ;;  %v1126_v38 = vadd.s32 4294967294, %v719_v55  ;;  %v780_v41 = vor.u32 %v779_v34, %v778_v27  ;;  %vm789_vm13 = vcmp.lt.s32.totalorder %v768_v18, 3 }
 0x210   :  { %vm790_vm14 = vcmp.lt.s32.totalorder %v768_v18, 4  ;;  %v791_v54 = vsel %vm787_vm10, %v771_v31, %v774_v51  ;;  %v975_v40 = vsel %vm974_vm15, %v973_v11, 0  ;;  %v876_v11 = vshll.u32 %v1403_v8, %v1631_v61 }
 0x211   :  { %v440_v53 = vrot.slane %v439_v29, 4  ;;  %vm1127_vm11 = vcmp.lt.s32.totalorder %v1126_v38, 0  ;;  %v792_v6 = vsel %vm790_vm14, %v780_v41, 2102212464  ;;  %v796_v16 = vsel %vm790_vm14, %v783_v60, 920167782 }
 0x212   :  { %v722_v62 = vsel %vm1127_vm11, 0, %v1126_v38  ;;  %v793_v27 = vsel %vm789_vm13, %v777_v52, %v792_v6  ;;  %v799_v55 = vsel %vm787_vm10, %v777_v52, %v780_v41  ;;  %v800_v4 = vsel %vm790_vm14, %v786_v35, 1326507024 }
 0x213   :  { %v441_v13 = vadd.f32 %v440_v53, %v439_v29  ;;  %v723_v29 = vsub.s32 32, %v722_v62  ;;  %v724_v53 = vshll.u32 %v715_v1, %v722_v62  ;;  %v727_v15 = vsub.s32 4294967266, %v722_v62 }
 0x214   :  { %v794_v23 = vsel %vm788_vm12, %v791_v54, %v793_v27  ;;  %v801_v34 = vsel %vm789_vm13, %v783_v60, %v800_v4  ;;  %v866_v62 = vand.u32 8388607, %v859_v22  ;;  %v883_v54 = vshrl.u32 %v1406_v17, %v1634_v21 }
 0x215   :  { %v442_v28 = vrot.slane %v441_v13, 2  ;;  %v725_v26 = vshrl.u32 %v707_v5, %v723_v29  ;;  %v728_v24 = vadd.s32 127, %v727_v15  ;;  %v802_v39 = vsel %vm788_vm12, %v799_v55, %v801_v34 }
 0x216   :  { %v810_v60 = vmul.u32 %v1637_v56, %v794_v23  ;;  %v877_v29 = vshrl.u32 %v1404_v12, %v1634_v21  ;;  %v882_v15 = vshll.u32 %v1405_v14, %v1631_v61  ;;  %v872_v6 = vshrl.u32 %v1613_v37, 5 }
 0x217   :  { %v443_v36 = vadd.f32 %v442_v28, %v441_v13  ;;  %v795_v13 = vsel %vm787_vm10, %v774_v51, %v777_v52  ;;  %v797_v28 = vsel %vm789_vm13, %v780_v41, %v796_v16  ;;  %v726_v1 = vor.u32 %v725_v26, %v724_v53 }
 0x218   :  { %v729_v32 = vshll.u32 %v728_v24, 23  ;;  %v798_v31 = vsel %vm788_vm12, %v795_v13, %v797_v28  ;;  %v1666_v51 = vmul.u32.u64.low %v1637_v56, %v802_v39  ;;  %v1667_v52 = vmul.u32.u64.high %v1637_v56, %v802_v39, %v1666_v51 }
 0x219   :  { %v444_v57 = vrot.slane %v443_v36, 1  ;;  %v885_v41 = vshll.u32 %v1406_v17, %v1631_v61  ;;  %v733_v35 = vcvt.s32.f32 %v726_v1  ;;  %v879_v53 = vshll.u32 %v1404_v12, %v1631_v61 }
 0x21a   :  { %v730_v38 = vor.u32 4788187, %v729_v32  ;;  %v1693_v13 = vshrl.u32 %v975_v40, 5  ;;  %v886_v16 = vshrl.u32 %v1407_v20, %v1634_v21  ;;  %v867_v24 = vor.u32 8388608, %v866_v62 }
 0x21b   :  { %v445_v0 = vadd.f32 %v444_v57, %v443_v36  ;;  %v1660_v5 = vmul.u32.u64.low %v1637_v56, %v798_v31  ;;  %v1661_v36 = vmul.u32.u64.high %v1637_v56, %v798_v31, %v1660_v5  ;;  %v880_v56 = vshrl.u32 %v1405_v14, %v1634_v21 }
 0x21c   :  { %v731_v57 = vand.u32 2147483647, %v730_v38  ;;  %v875_v27 = vshrl.u32 %v1403_v8, %v1634_v21  ;;  %v888_v4 = vshll.u32 %v1407_v20, %v1631_v61  ;;  %v878_v1 = vor.u32 %v877_v29, %v876_v11 }
 0x21d   :  { %v446_v25 = vmul.f32 0.0625, %v445_v0  ;;  %v813_v18 = vadd.s32 1, %v1661_v36  ;;  %v1676_v0 = vand.u32 31, %v975_v40  ;;  %vm812_vm2 = vc.u32 %v1667_v52, %v1660_v5 }
 0x21e   :  { %v881_v32 = vor.u32 %v880_v56, %v879_v53  ;;  %v884_v31 = vor.u32 %v883_v54, %v882_v15  ;;  %v887_v23 = vor.u32 %v886_v16, %v885_v41  ;;  %vm891_vm4 = vcmp.lt.s32.totalorder %v872_v6, 1 }
 0x21f   :  { %v447_v7 = vadd.f32 1e-06, %v446_v25  ;;  %v734_v25 = vmul.f32 %v733_v35, %v731_v57  ;;  %v814_v26 = vsel %vm812_vm2, %v813_v18, %v1661_v36  ;;  %v1707_v55 = vsub.s32 32, %v1676_v0 }
 0x220   :  { %v815_v37 = vadd.s32 %v814_v26, %v810_v60  ;;  %vm894_vm5 = vcmp.lt.s32.totalorder %v872_v6, 4  ;;  %vm892_vm6 = vcmp.lt.s32.totalorder %v872_v6, 2  ;;  %vm893_vm7 = vcmp.lt.s32.totalorder %v872_v6, 3 }
 0x221   :  { %1248 = vrsqrt.f32 %v447_v7  ;;  %v889_v7 = vshrl.u32 %v1408_v33, %v1634_v21  ;;  %v735_v38 = vxor.u32 2147483648, %v734_v25  ;;  %v896_v39 = vsel %vm894_vm5, %v884_v31, 2102212464 }
 0x222   :  { %v816_v34 = vadd.s32 536870912, %v815_v37  ;;  %v895_v21 = vsel %vm891_vm4, %v875_v27, %v878_v1  ;;  %v897_v57 = vsel %vm893_vm7, %v881_v32, %v896_v39  ;;  %v899_v41 = vsel %vm891_vm4, %v878_v1, %v881_v32 }
 0x223   :  { %v890_v36 = vor.u32 %v889_v7, %v888_v4  ;;  %v900_v35 = vsel %vm894_vm5, %v887_v23, 920167782  ;;  %v907_v56 = vshll.u32 %v867_v24, 8  ;;  %v898_v16 = vsel %vm892_vm6, %v895_v21, %v897_v57 }
 0x224   :  { %v1715_v51 = vshrl.u32 %v816_v34, 30  ;;  %v901_v29 = vsel %vm893_vm7, %v884_v31, %v900_v35  ;;  %v980_v1 = vshll.u32 %v1403_v8, %v1676_v0  ;;  %vm995_vm10 = vcmp.lt.s32.totalorder %v1693_v13, 1 }
 0x225   :  { %v904_v60 = vsel %vm894_vm5, %v890_v36, 1326507024  ;;  %v914_v34 = vmul.u32 %v907_v56, %v898_v16  ;;  %v983_v36 = vshll.u32 %v1404_v12, %v1676_v0  ;;  %v990_v16 = vshrl.u32 %v1407_v20, %v1707_v55 }
 0x226   :  { %v818_v11 = vshll.u32 %v1715_v51, 30  ;;  %v905_v53 = vsel %vm893_vm7, %v887_v23, %v904_v60  ;;  %vm997_vm11 = vcmp.lt.s32.totalorder %v1693_v13, 3  ;;  %vm998_vm12 = vcmp.lt.s32.totalorder %v1693_v13, 4 }
 0x227   :  { %vm996_vm13 = vcmp.lt.s32.totalorder %v1693_v13, 2  ;;  %vm757_vm14 = vcmp.lt.s32.totalorder %v1605_v30, 0  ;;  %vm1830_vm15 = vcmp.le.f32.partialorder %v755_v58, 0.7853982  ;;  %vm743_vm5 = vweird.f32 %v1562_v63 }
 0x22b   :  { %v1249_v3 = vpop.eup %1248 }
 0x22c   :  { %v449_v40 = vmul.f32 %v1249_v3, %v1618_v43  ;;  %v450_v61 = vmul.f32 %v1249_v3, %v1621_v49  ;;  %v903_v43 = vsel %vm891_vm4, %v881_v32, %v884_v31  ;;  %v736_v49 = vsel %vm653_vm1, %v735_v38, %v734_v25 }
 0x22d   :  { %v906_v26 = vsel %vm892_vm6, %v903_v43, %v905_v53  ;;  %v739_v6 = vsel %vm1702_vm3, %v1562_v63, %v736_v49  ;;  %v984_v3 = vshrl.u32 %v1405_v14, %v1707_v55  ;;  %v607_v63 = vld [vmem:[#allocation7] sm:$0xff] }
 0x22e   :  { %v459_v62 = vmul.f32 %v1531_v42, %v449_v40  ;;  %v460_v18 = vmul.f32 %v1535_v45, %v450_v61  ;;  %v1734_v42 = vsub.s32 %v815_v37, %v818_v11  ;;  %v902_v45 = vsel %vm892_vm6, %v899_v41, %v901_v29 }
 0x22f   :  { %v1739_v25 = vmul.u32.u64.low %v907_v56, %v902_v45  ;;  %v1740_v27 = vmul.u32.u64.high %v907_v56, %v902_v45, %v1739_v25  ;;  %v1753_v4 = vmul.u32.u64.low %v907_v56, %v906_v26  ;;  %v1754_v7 = vmul.u32.u64.high %v907_v56, %v906_v26, %v1753_v4 }
 0x230   :  { %v1729_v15 = vadd.f32 %v1541_v46, %v460_v18  ;;  %v1732_v54 = vadd.f32 %v1587_v48, %v459_v62  ;;  %v811_v48 = vadd.s32 %v1660_v5, %v1667_v52  ;;  %v821_v37 = vsub.s32 0, %v1734_v42 }
 0x231   :  { %v917_v5 = vadd.s32 1, %v1740_v27  ;;  %v981_v52 = vshrl.u32 %v1404_v12, %v1707_v55  ;;  %1250 = vcosq.f32 %v739_v6  ;;  %vm916_vm8 = vc.u32 %v1754_v7, %v1739_v25 }
 0x232   :  { %v472_v24 = vmul.f32 %v1729_v15, %v1729_v15  ;;  %v471_v46 = vmul.f32 %v1732_v54, %v1732_v54  ;;  %v1129_v23 = vmin.u32 %v821_v37, %v1734_v42  ;;  %1252 = vsinq.f32 %v739_v6 }
 0x233   :  { %v963_v61 = vand.u32 2147483647, %v1609_v59  ;;  %v982_v21 = vor.u32 %v981_v52, %v980_v1  ;;  %v918_v12 = vsel %vm916_vm8, %v917_v5, %v1740_v27  ;;  %v979_v62 = vshrl.u32 %v1403_v8, %v1707_v55 }
 0x234   :  { %v474_v32 = vmul.f32 %v472_v24, %v1729_v15  ;;  %v473_v31 = vmul.f32 %v471_v46, %v1732_v54  ;;  %v823_v40 = vclz %v1129_v23  ;;  %v919_v60 = vadd.s32 %v918_v12, %v914_v34 }
 0x235   :  { %v1776_v18 = vor.u32 %v984_v3, %v983_v36  ;;  %v986_v11 = vshll.u32 %v1405_v14, %v1676_v0  ;;  %v987_v29 = vshrl.u32 %v1406_v17, %v1707_v55  ;;  %v989_v45 = vshll.u32 %v1406_v17, %v1676_v0 }
 0x236   :  { %v476_v38 = vmul.f32 0.044715, %v474_v32  ;;  %v475_v39 = vmul.f32 0.044715, %v473_v31  ;;  %v1130_v35 = vadd.s32 4294967294, %v823_v40  ;;  %v920_v56 = vadd.s32 536870912, %v919_v60 }
 0x237   :  { %v992_v24 = vshll.u32 %v1407_v20, %v1676_v0  ;;  %v1792_v6 = vor.u32 %v987_v29, %v986_v11  ;;  %v993_v17 = vshrl.u32 %v1408_v33, %v1707_v55  ;;  %v1807_v33 = vsel %vm995_vm10, %v982_v21, %v1776_v18 }
 0x238   :  { %v478_v57 = vadd.f32 %v476_v38, %v1729_v15  ;;  %v477_v41 = vadd.f32 %v475_v39, %v1732_v54  ;;  %vm1131_vm9 = vcmp.lt.s32.totalorder %v1130_v35, 0  ;;  %v1787_v14 = vshrl.u32 %v920_v56, 30 }
 0x239   :  { %v826_v53 = vsel %vm1131_vm9, 0, %v1130_v35  ;;  %v970_v5 = vand.u32 8388607, %v963_v61  ;;  %v994_v3 = vor.u32 %v993_v17, %v992_v24  ;;  %v991_v39 = vor.u32 %v990_v16, %v989_v45 }
 0x23a   :  { %v480_v43 = vmul.f32 0.7978846, %v478_v57  ;;  %v479_v49 = vmul.f32 0.7978846, %v477_v41  ;;  %v827_v8 = vsub.s32 32, %v826_v53  ;;  %v828_v26 = vshll.u32 %v1734_v42, %v826_v53 }
 0x23b   :  { %v831_v27 = vsub.s32 4294967266, %v826_v53  ;;  %v922_v4 = vshll.u32 %v1787_v14, 30  ;;  %v999_v42 = vsel %vm995_vm10, %v979_v62, %v982_v21  ;;  %v1251_v1 = vpop.eup %1250  ;;  %v1824_v40 = vrot.slane %v1550_v10, %v1504_v19 }
 0x23c   :  { %1254 = vtanh.f32 %v479_v49  ;;  %v829_v46 = vshrl.u32 %v811_v48, %v827_v8  ;;  %v1000_v48 = vsel %vm998_vm12, %v1792_v6, 2102212464  ;;  %v1253_v55 = vpop.eup %1252  ;;  %v737_v12 = vsub.s32 4, %v1623_v50 }
 0x23d   :  { %1256 = vtanh.f32 %v480_v43  ;;  %v832_v37 = vadd.s32 127, %v831_v27  ;;  %v1809_v32 = vsub.s32 %v919_v60, %v922_v4  ;;  %v1001_v31 = vsel %vm997_vm11, %v1776_v18, %v1000_v48 }
 0x23e   :  { %v830_v20 = vor.u32 %v829_v46, %v828_v26  ;;  %v1819_v52 = vsel %vm996_vm13, %v999_v42, %v1001_v31  ;;  %v971_v60 = vor.u32 8388608, %v970_v5  ;;  %v915_v19 = vadd.s32 %v1739_v25, %v1754_v7 }
 0x23f   :  { %v833_v0 = vshll.u32 %v832_v37, 23  ;;  %v925_v36 = vsub.s32 0, %v1809_v32  ;;  %v1008_v43 = vsel %vm998_vm12, %v994_v3, 1326507024  ;;  %v738_v58 = vsel %vm653_vm1, %v737_v12, %v1623_v50 }
 0x240   :  { %v837_v34 = vcvt.s32.f32 %v830_v20  ;;  %v1004_v53 = vsel %vm998_vm12, %v991_v39, 920167782  ;;  %v740_v45 = vsel %vm1702_vm3, 0, %v738_v58  ;;  %v1007_v25 = vsel %vm995_vm10, %v1776_v18, %v1792_v6 }
 0x241   :  { %v834_v23 = vor.u32 4788187, %v833_v0  ;;  %v1133_v21 = vmin.u32 %v925_v36, %v1809_v32  ;;  %v744_v26 = vadd.s32 3, %v740_v45  ;;  %v1009_v50 = vsel %vm997_vm11, %v991_v39, %v1008_v43 }
 0x242   :  { %v841_v24 = vsub.s32 4, %v1715_v51  ;;  %v748_v17 = vxor.u32 2147483648, %v1253_v55  ;;  %v751_v4 = vxor.u32 2147483648, %v1251_v1  ;;  %v1005_v36 = vsel %vm997_vm11, %v1792_v6, %v1004_v53 }
 0x243   :  { %v835_v38 = vand.u32 2147483647, %v834_v23  ;;  %v927_v10 = vclz %v1133_v21  ;;  %v745_v18 = vand.u32 3, %v744_v26  ;;  %v1011_v3 = vshll.u32 %v971_v60, 8 }
 0x244   :  { %v842_v42 = vsel %vm757_vm14, %v841_v24, %v1715_v51  ;;  %vm847_vm8 = vweird.f32 %v1605_v30  ;;  %v945_v13 = vsub.s32 4, %v1787_v14  ;;  %vm861_vm11 = vcmp.lt.s32.totalorder %v1567_v2, 0 }
 0x245   :  { %v838_v35 = vmul.f32 %v837_v34, %v835_v38  ;;  %v1134_v16 = vadd.s32 4294967294, %v927_v10  ;;  %vm747_vm2 = vcmp.eq.s32.totalorder %v745_v18, 0  ;;  %vm750_vm3 = vcmp.eq.s32.totalorder %v745_v18, 2 }
 0x246   :  { %v1255_v57 = vpop.eup %1254  ;;  %v844_v20 = vsel %vm1830_vm15, 0, %v842_v42  ;;  %vm746_vm4 = vcmp.lt.s32.totalorder %v745_v18, 2  ;;  %v749_v0 = vsel %vm747_vm2, %v1251_v1, %v748_v17  ;;  %v752_v48 = vsel %vm750_vm3, %v751_v4, %v1253_v55 }
 0x247   :  { %v1257_v62 = vpop.eup %1256  ;;  %v483_v11 = vadd.f32 1.0, %v1255_v57  ;;  %v839_v29 = vxor.u32 2147483648, %v838_v35  ;;  %vm1135_vm1 = vcmp.lt.s32.totalorder %v1134_v16, 0  ;;  %v753_v31 = vsel %vm746_vm4, %v749_v0, %v752_v48 }
 0x248   :  { %v484_v49 = vadd.f32 1.0, %v1257_v62  ;;  %v930_v37 = vsel %vm1135_vm1, 0, %v1134_v16  ;;  %v754_v5 = vsel %vm743_vm5, nan, %v753_v31  ;;  %v1010_v1 = vsel %vm996_vm13, %v1007_v25, %v1009_v50  ;;  %v608_v16 = vld [vmem:[#allocation7 + $0x8] sm:$0xff] }
 0x249   :  { %v485_v56 = vmul.f32 0.5, %v483_v11  ;;  %v840_v8 = vsel %vm757_vm14, %v839_v29, %v838_v35  ;;  %v931_v23 = vsub.s32 32, %v930_v37  ;;  %v932_v34 = vshll.u32 %v1809_v32, %v930_v37 }
 0x24a   :  { %v486_v7 = vmul.f32 0.5, %v484_v49  ;;  %v843_v28 = vsel %vm1830_vm15, %v1605_v30, %v840_v8  ;;  %v935_v51 = vsub.s32 4294967266, %v930_v37  ;;  %v1071_v55 = vmul.f32 %v1824_v40, %v754_v5 }
 0x24b   :  { %v487_v27 = vmul.f32 %v485_v56, %v1732_v54  ;;  %1258 = vcosq.f32 %v843_v28  ;;  %v933_v39 = vshrl.u32 %v915_v19, %v931_v23  ;;  %v1006_v57 = vsel %vm996_vm13, %v1807_v33, %v1005_v36  ;;  %v609_v36 = vld [vmem:[#allocation7 + $0x10] sm:$0xff] }
 0x24c   :  { %v488_v46 = vmul.f32 %v486_v7, %v1729_v15  ;;  %1260 = vsinq.f32 %v843_v28  ;;  %v848_v15 = vadd.s32 3, %v844_v20  ;;  %v936_v21 = vadd.s32 127, %v935_v51 }
 0x24d   :  { %v934_v32 = vor.u32 %v933_v39, %v932_v34  ;;  %v1075_v41 = vadd.f32 %v1071_v55, %v607_v63  ;;  %v1880_v35 = vmul.u32.u64.low %v1011_v3, %v1010_v1  ;;  %v1881_v12 = vmul.u32.u64.high %v1011_v3, %v1010_v1, %v1880_v35 }
 0x24e   :  { %v1171_v54 = vpack.c.bf16 %v488_v46, %v487_v27  ;;  %v849_v38 = vand.u32 3, %v848_v15  ;;  %v937_v6 = vshll.u32 %v936_v21, 23  ;;  %v1018_v53 = vmul.u32 %v1011_v3, %v1819_v52 }
 0x24f   :  { %v941_v62 = vcvt.s32.f32 %v934_v32  ;;  %1079 = vst [vmem:[#allocation9] sm:$0xff] %v1075_v41  ;;  %v1883_v10 = vmul.u32.u64.low %v1011_v3, %v1006_v57  ;;  %v1884_v43 = vmul.u32.u64.high %v1011_v3, %v1006_v57, %v1883_v10  ;;  %v946_v8 = vsel %vm861_vm11, %v945_v13, %v1787_v14 }
 0x250   :  { %1172 = vmatprep.subr.bf16.mxu1 %v1171_v54  ;;  %vm851_vm6 = vcmp.eq.s32.totalorder %v849_v38, 0  ;;  %vm854_vm7 = vcmp.eq.s32.totalorder %v849_v38, 2  ;;  %v938_v19 = vor.u32 4788187, %v937_v6  ;;  %vm850_vm9 = vcmp.lt.s32.totalorder %v849_v38, 2 }
 0x251   :  { %1174 = vmatpush3.bf16.msra.mxu1 %v1171_v54  ;;  %v1019_v29 = vadd.s32 %v1883_v10, %v1881_v12  ;;  %vm1020_vm10 = vc.u32 %v1881_v12, %v1883_v10  ;;  %vm951_vm15 = vweird.f32 %v1567_v2  ;;  %vm965_vm2 = vcmp.lt.s32.totalorder %v1609_v59, 0 }
 0x252   :  { %v939_v49 = vand.u32 2147483647, %v938_v19  ;;  %vm964_vm3 = vcmp.le.f32.partialorder %v963_v61, 0.7853982 }
 0x254   :  { %1162 = vmatmul.mubr.msk.f32.vlgmr.msra.gmra.mrb[0].mxu1 %vm346_vm0, %v1533_v44  ;;  %v942_v45 = vmul.f32 %v941_v62, %v939_v49 }
 0x255   :  { %1164 = vmatprep.mubr.msk.f32.mxu1 %vm346_vm0, %v1539_v9  ;;  %v1259_v60 = vpop.eup %1258 }
 0x256   :  { %v1261_v11 = vpop.eup %1260  ;;  %v855_v44 = vxor.u32 2147483648, %v1259_v60  ;;  %v943_v7 = vxor.u32 2147483648, %v942_v45 }
 0x257   :  { %v852_v9 = vxor.u32 2147483648, %v1261_v11 }
 0x258   :  { %1165 = vmatmul.mubr.msk.f32.gmra.mrb[2].mxu1 %vm346_vm0, %v1543_v47  ;;  %v856_v33 = vsel %vm854_vm7, %v855_v44, %v1261_v11  ;;  %v1021_v47 = vadd.s32 1, %v1884_v43  ;;  %vm1897_vm0 = vcmp.le.f32.partialorder %v859_v22, 0.7853982  ;;  %v944_v27 = vsel %vm861_vm11, %v943_v7, %v942_v45  ;;  %v610_v45 = vld [vmem:[#allocation7 + $0x18] sm:$0xff] }
 0x259   :  { %v853_v58 = vsel %vm851_vm6, %v1259_v60, %v852_v9  ;;  %v947_v24 = vsel %vm1897_vm0, %v1567_v2, %v944_v27  ;;  %v948_v22 = vsel %vm1897_vm0, 0, %v946_v8  ;;  %vm1055_vm7 = vweird.f32 %v1609_v59 }
 0x25a   :  { %v857_v56 = vsel %vm850_vm9, %v853_v58, %v856_v33  ;;  %v1022_v26 = vsel %vm1020_vm10, %v1021_v47, %v1884_v43  ;;  %1262 = vcosq.f32 %v947_v24  ;;  %v952_v14 = vadd.s32 3, %v948_v22 }
 0x25b   :  { %v858_v30 = vsel %vm847_vm8, nan, %v857_v56  ;;  %v1023_v50 = vadd.s32 %v1022_v26, %v1018_v53  ;;  %1264 = vsinq.f32 %v947_v24 }
 0x25c   :  { %v1072_v52 = vmul.f32 %v1824_v40, %v858_v30  ;;  %v953_v4 = vand.u32 3, %v952_v14 }
 0x25d   :  { %v1024_v46 = vadd.s32 536870912, %v1023_v50 }
 0x25e   :  { %v1076_v28 = vadd.f32 %v1072_v52, %v608_v16  ;;  %vm958_vm12 = vcmp.eq.s32.totalorder %v953_v4, 2  ;;  %vm955_vm13 = vcmp.eq.s32.totalorder %v953_v4, 0  ;;  %vm954_vm14 = vcmp.lt.s32.totalorder %v953_v4, 2 }
 0x25f   :  { %v1025_v18 = vshrl.u32 %v1024_v46, 30 }
 0x260   :  { %1080 = vst [vmem:[#allocation9 + $0x8] sm:$0xff] %v1076_v28 }
 0x261   :  { %v1026_v37 = vshll.u32 %v1025_v18, 30  ;;  %v1049_v60 = vsub.s32 4, %v1025_v18 }
 0x263   :  { %v1027_v17 = vsub.s32 %v1023_v50, %v1026_v37  ;;  %v1050_v44 = vsel %vm965_vm2, %v1049_v60, %v1025_v18 }
 0x264   :  { %v1263_v20 = vpop.eup %1262  ;;  %v1052_v43 = vsel %vm964_vm3, 0, %v1050_v44 }
 0x265   :  { %v1029_v42 = vsub.s32 0, %v1027_v17  ;;  %v1265_v0 = vpop.eup %1264  ;;  %v959_v48 = vxor.u32 2147483648, %v1263_v20  ;;  %v1056_v9 = vadd.s32 3, %v1052_v43 }
 0x266   :  { %v956_v31 = vxor.u32 2147483648, %v1265_v0 }
 0x267   :  { %v1137_v54 = vmin.u32 %v1029_v42, %v1027_v17  ;;  %v960_v23 = vsel %vm958_vm12, %v959_v48, %v1265_v0  ;;  %v1057_v13 = vand.u32 3, %v1056_v9 }
 0x268   :  { %v957_v5 = vsel %vm955_vm13, %v1263_v20, %v956_v31 }
 0x269   :  { %v1031_v15 = vclz %v1137_v54  ;;  %v961_v51 = vsel %vm954_vm14, %v957_v5, %v960_v23  ;;  %vm1062_vm4 = vcmp.eq.s32.totalorder %v1057_v13, 2  ;;  %vm1059_vm5 = vcmp.eq.s32.totalorder %v1057_v13, 0 }
 0x26a   :  { %v962_v3 = vsel %vm951_vm15, nan, %v961_v51  ;;  %vm1058_vm6 = vcmp.lt.s32.totalorder %v1057_v13, 2 }
 0x26b   :  { %v1138_v34 = vadd.s32 4294967294, %v1031_v15  ;;  %v1073_v63 = vmul.f32 %v1824_v40, %v962_v3 }
 0x26d   :  { %vm1139_vm1 = vcmp.lt.s32.totalorder %v1138_v34, 0  ;;  %v1077_v57 = vadd.f32 %v1073_v63, %v609_v36 }
 0x26e   :  { %v1034_v38 = vsel %vm1139_vm1, 0, %v1138_v34 }
 0x26f   :  { %v1035_v39 = vsub.s32 32, %v1034_v38  ;;  %v1036_v1 = vshll.u32 %v1027_v17, %v1034_v38  ;;  %v1039_v55 = vsub.s32 4294967266, %v1034_v38  ;;  %1081 = vst [vmem:[#allocation9 + $0x10] sm:$0xff] %v1077_v57 }
 0x271   :  { %v1037_v21 = vshrl.u32 %v1019_v29, %v1035_v39  ;;  %v1040_v32 = vadd.s32 127, %v1039_v55 }
 0x273   :  { %v1038_v41 = vor.u32 %v1037_v21, %v1036_v1  ;;  %v1041_v6 = vshll.u32 %v1040_v32, 23 }
 0x275   :  { %v1042_v2 = vor.u32 4788187, %v1041_v6  ;;  %v1045_v35 = vcvt.s32.f32 %v1038_v41 }
 0x277   :  { %v1043_v12 = vand.u32 2147483647, %v1042_v2 }
 0x279   :  { %v1046_v62 = vmul.f32 %v1045_v35, %v1043_v12 }
 0x27b   :  { %v1047_v11 = vxor.u32 2147483648, %v1046_v62 }
 0x27d   :  { %v1048_v19 = vsel %vm965_vm2, %v1047_v11, %v1046_v62 }
 0x27e   :  { %v1051_v10 = vsel %vm964_vm3, %v1609_v59, %v1048_v19 }
 0x27f   :  { %1266 = vcosq.f32 %v1051_v10 }
 0x280   :  { %1268 = vsinq.f32 %v1051_v10 }
 0x289   :  { %v1267_v33 = vpop.eup %1266 }
 0x28a   :  { %v1269_v49 = vpop.eup %1268  ;;  %v1063_v29 = vxor.u32 2147483648, %v1267_v33 }
 0x28b   :  { %v1060_v58 = vxor.u32 2147483648, %v1269_v49 }
 0x28c   :  { %v1064_v61 = vsel %vm1062_vm4, %v1063_v29, %v1269_v49 }
 0x28d   :  { %v1061_v53 = vsel %vm1059_vm5, %v1267_v33, %v1060_v58 }
 0x28e   :  { %v1065_v56 = vsel %vm1058_vm6, %v1061_v53, %v1064_v61 }
 0x28f   :  { %v1066_v47 = vsel %vm1055_vm7, nan, %v1065_v56 }
 0x290   :  { %v1074_v16 = vmul.f32 %v1824_v40, %v1066_v47 }
 0x292   :  { %v1078_v30 = vadd.f32 %v1074_v16, %v610_v45 }
 0x294   :  { %1082 = vst [vmem:[#allocation9 + $0x18] sm:$0xff] %v1078_v30 }
 0x295   :  { %1347 = shalt.err (!%p1344_p0)
}
 0x296   :  { %s1348_s11 = scalar_lea.hbm %s1953_s5, 512 }
 0x297   :  { %p1349_p1 = scmp.ne.s32.totalorder %s1953_s5, %s1348_s11  ;;  %p1352_p2 = scmp.lt.u32.totalorder %s1348_s11, %s1953_s5 }
 0x299   :  { %p1354_p3 = pnand %p1352_p2, %p1349_p1 }
 0x29b   :  { %1357 = shalt.err (!%p1354_p3)
}
 0x29c   :  { %1106 = dma.vmem_to_hbm [thread:$0]  %s1101_s7, 512, %s1953_s5, [#allocation10], %s1390_s30, %s1390_s30, %s1391_s6   ;;  %v492_v59 = vpop.permute.xlu0 %491  ;;  %v497_v40 = vpop.permute.xlu1 %496 }
 0x29d   :  { %s1410_s17 = smov [#allocation8]  }
 0x29e   :  { %s1088_s18 = sshll.u32 %s1410_s17, 4  ;;  %s1089_s18 = int_to_ptr.vmem [resolvable:$true] %s1088_s18 }
 0x29f   :  { %s1358_s5 = scalar_lea.vmem %s1089_s18, 512  ;;  %p1363_p5 = scmp.lt.s32.totalorder %s1089_s18, %s1089_s18 }
 0x2a0   :  { %v507_v52 = vpop.permute.xlu0 %506  ;;  %v502_v27 = vpop.permute.xlu1 %501  ;;  %p1359_p4 = scmp.ne.s32.totalorder %s1089_s18, %s1358_s5  ;;  %p1364_p6 = scmp.lt.s32.totalorder %s1358_s5, %s1358_s5 }
 0x2a2   :  { %p1365_p7 = por %p1364_p6, %p1363_p5 }
 0x2a4   :  { %p1366_p8 = pnand %p1365_p7, %p1359_p4 }
 0x327   :  { %v1163_v25 = vpop.f32.mrb[0].mxu1 }
 0x328   :  { %v589_v7 = vadd.f32 %v1163_v25, %v497_v40  ;;  %v583_v8 = vpop.f32.mrb[1].mxu1 }
 0x329   :  { %v584_v26 = vadd.f32 %v583_v8, %v492_v59 }
 0x32a   :  { %603 = vst [vmem:[#allocation8 + $0x8] sm:$0xff] %v589_v7 }
 0x32b   :  { %602 = vst [vmem:[#allocation8] sm:$0xff] %v584_v26  ;;  %v1166_v50 = vpop.f32.mrb[2].mxu1 }
 0x32c   :  { %v599_v28 = vadd.f32 %v1166_v50, %v507_v52  ;;  %v593_v24 = vpop.f32.mrb[3].mxu1 }
 0x32d   :  { %v594_v22 = vadd.f32 %v593_v24, %v502_v27 }
 0x32e   :  { %605 = vst [vmem:[#allocation8 + $0x18] sm:$0xff] %v599_v28 }
 0x32f   :  { %604 = vst [vmem:[#allocation8 + $0x10] sm:$0xff] %v594_v22 }
 0x330   :  { %1369 = shalt.err (!%p1366_p8)
}
 0x331   :  { %s1370_s22 = scalar_lea.hbm %s1952_s4, 512 }
 0x332   :  { %p1371_p9 = scmp.ne.s32.totalorder %s1952_s4, %s1370_s22  ;;  %p1374_p10 = scmp.lt.u32.totalorder %s1370_s22, %s1952_s4 }
 0x334   :  { %p1376_p11 = pnand %p1374_p10, %p1371_p9 }
 0x336   :  { %1379 = shalt.err (!%p1376_p11)
}
 0x337   :  { %1094 = dma.vmem_to_hbm [thread:$0]  %s1089_s18, 512, %s1952_s4, [#allocation4], %s1390_s30, %s1390_s30, %s1391_s6  }
 0x338   :  { %1384 = dma.done.wait [#allocation4], 512  }
 0x339   :  { %1385 = vsyncadd [#allocation4], 4294966784 }
 0x33a   :  { %1386 = dma.done.wait [#allocation10], 512  }
 0x33b   :  { %1387 = vsyncadd [#allocation10], 4294966784 }
 0x33c   :  { %1113 = vsyncpa [#allocation3], 1 }
 0x33d   :  { %1114 = vsyncpa [#allocation6], 1 }
 0x33e   :  { %1115 = vsyncpa [#allocation4], 1 }
 0x33f   :  { %1116 = vsyncpa [#allocation10], 1 }

</bundles_post_ra>
